<compile_context>
chip_gen: v7x
topology: tpu7x:2x2x1
jax: 0.10.0
libtpu: 0.0.40
codegen_flags: <defaults>
</compile_context>

<pallas_src>
import functools

import jax
import jax.numpy as jnp
import numpy as np
from jax import lax
from jax.experimental import pallas as pl
from jax.experimental.pallas import tpu as pltpu


# ----------------------------------------------------------------------------
# Fused Pallas kernel: LSTM stack + BatchNorm1d + Linear
# ----------------------------------------------------------------------------
def fused_lstm_kernel(*refs, num_layers, T, Bp, B, H):
    """All refs are VMEM.

    refs layout:
      [ x (T*Bp, D_in),
        (wx_0, whh_0, b_0), ..., (wx_{L-1}, whh_{L-1}, b_{L-1}),
        gamma (1,H), beta (1,H), wfc (H,O), bfc (1,O),
        out (B, O),
        gx_sc (T*Bp, 4H), hseq_sc (T*Bp, 4H), h_sc (Bp, 4H), c_sc (Bp, 4H) ]

    Weight packing (done in the wrapper):
      wx_l : (D_in, 4H) for layer 0, (4H, 4H) zero-row-padded for layers >= 1
      whh_l: (4H, 4H) zero-row-padded (rows H:4H are 0)
      b_l  : (1, 4H) = b_ih + b_hh, gate order (i, f, g, o)
    """
    G = 4 * H
    x_ref = refs[0]
    layer_refs = refs[1:1 + 3 * num_layers]
    gamma_ref, beta_ref, wfc_ref, bfc_ref = refs[1 + 3 * num_layers:5 + 3 * num_layers]
    out_ref = refs[5 + 3 * num_layers]
    gx_sc, hseq_sc, h_sc, c_sc = refs[6 + 3 * num_layers:]

    for layer in range(num_layers):
        wx_ref = layer_refs[3 * layer + 0]
        whh_ref = layer_refs[3 * layer + 1]
        b_ref = layer_refs[3 * layer + 2]

        # ---- Hoisted input projection for the whole sequence (one MXU matmul). ----
        # Bias is folded in here, so nothing but h @ W_hh^T remains on the serial path.
        src = x_ref[...] if layer == 0 else hseq_sc[...]
        gx_sc[...] = (
            jnp.dot(src, wx_ref[...], preferred_element_type=jnp.float32)
            + b_ref[...]
        )

        # Hoist the invariant recurrent weight load out of the time loop.
        whh = whh_ref[...]                      # (4H, 4H), rows H:4H are zero

        h_sc[...] = jnp.zeros_like(h_sc)
        c_sc[...] = jnp.zeros_like(c_sc)

        def step(t, carry, layer=layer, whh=whh):
            base = pl.multiple_of(t * Bp, Bp)   # sublane-tile aligned offset
            gates = gx_sc[pl.ds(base, Bp), :] + jnp.dot(
                h_sc[...], whh, preferred_element_type=jnp.float32
            )                                   # (Bp, 4H) = [ i | f | g | o ]
            sg = jax.nn.sigmoid(gates)          # EUP, full width
            th = jnp.tanh(gates)                # EUP, full width
            # Bring f / g / o onto lanes [0:H] with XLU rotates (np.roll semantics);
            # i is already there.  Lanes [H:4H] carry bounded don't-care values.
            f_al = pltpu.roll(sg, shift=3 * H, axis=1)
            g_al = pltpu.roll(th, shift=2 * H, axis=1)
            o_al = pltpu.roll(sg, shift=1 * H, axis=1)
            c = f_al * c_sc[...] + sg * g_al
            h = o_al * jnp.tanh(c)
            c_sc[...] = c
            h_sc[...] = h
            if layer < num_layers - 1:
                # Lane-dense (Bp, 128) VMEM store; consumed by the next layer's
                # hoisted projection (zero-padded rows mask the don't-care lanes).
                hseq_sc[pl.ds(base, Bp), :] = h
            return carry

        lax.fori_loop(0, T, step, 0, unroll=True)

    # ---- fc head: BatchNorm1d (training-mode batch stats) + Dropout(0) + Linear ----
    h_last = h_sc[...][:B, :H]                                  # valid rows / lanes
    mean = jnp.mean(h_last, axis=0, keepdims=True)
    var = jnp.mean((h_last - mean) ** 2, axis=0, keepdims=True)  # biased variance
    hn = (h_last - mean) * lax.rsqrt(var + 1e-5)
    hn = hn * gamma_ref[...] + beta_ref[...]
    # Dropout(p=0) is the identity -> nothing to do.
    out_ref[...] = (
        jnp.dot(hn, wfc_ref[...], preferred_element_type=jnp.float32) + bfc_ref[...]
    )


# ----------------------------------------------------------------------------
# Wrapper: single pallas_call for the whole model
# ----------------------------------------------------------------------------
def _vmem_spec():
    return pl.BlockSpec(memory_space=pltpu.MemorySpace.VMEM)


@functools.partial(
    jax.jit, static_argnames=("in_shape", "out_shape", "hidden_shape", "lstm_layers")
)
def lstm_model_forward(x, params, *, in_shape, out_shape, hidden_shape, lstm_layers):
    # x: (B, 1, L)  ->  (B, T, in_shape)  ->  time-major, batch padded to sublane tile
    B = x.shape[0]
    L = x.shape[-1]
    T = L // in_shape
    H = hidden_shape
    G = 4 * H
    Bp = ((B + 7) // 8) * 8                     # pad batch to a full 8-row sublane tile

    seq = jnp.reshape(jnp.squeeze(x, axis=1), (B, T, in_shape)).astype(jnp.float32)
    x_tm = jnp.transpose(seq, (1, 0, 2))        # (T, B, in_shape)
    x_tm = jnp.pad(x_tm, ((0, 0), (0, Bp - B), (0, 0)))
    x_flat = jnp.reshape(x_tm, (T * Bp, in_shape))

    flat_inputs = [x_flat]
    for (wx, whh, b) in params["lstm"]:
        flat_inputs += [wx, whh, b]
    gamma, beta = params["bn"]
    wfc, bfc = params["fc"]
    flat_inputs += [gamma, beta, wfc, bfc]

    kernel = functools.partial(
        fused_lstm_kernel, num_layers=lstm_layers, T=T, Bp=Bp, B=B, H=H
    )

    return pl.pallas_call(
        kernel,
        out_shape=jax.ShapeDtypeStruct((B, out_shape), jnp.float32),
        in_specs=[_vmem_spec() for _ in flat_inputs],
        out_specs=_vmem_spec(),
        scratch_shapes=[
            pltpu.VMEM((T * Bp, G), jnp.float32),   # gx_sc: hoisted input projection
            pltpu.VMEM((T * Bp, G), jnp.float32),   # hseq_sc: inter-layer hidden sequence
            pltpu.VMEM((Bp, G), jnp.float32),       # h_sc
            pltpu.VMEM((Bp, G), jnp.float32),       # c_sc
        ],
    )(*flat_inputs)


# ----------------------------------------------------------------------------
# Parameter construction (nn.LSTM / nn.BatchNorm1d / nn.Linear shapes)
# ----------------------------------------------------------------------------
def init_params(key, in_shape, out_shape, hidden_shape, lstm_layers):
    H = hidden_shape
    G = 4 * H
    params = {"lstm": [], "bn": None, "fc": None}
    k = float(1.0 / np.sqrt(H))

    keys = jax.random.split(key, 4 * lstm_layers + 2)
    ki = 0
    for layer in range(lstm_layers):
        d_in = in_shape if layer == 0 else H
        w_ih = jax.random.uniform(keys[ki], (G, d_in), minval=-k, maxval=k,
                                  dtype=jnp.float32); ki += 1
        w_hh = jax.random.uniform(keys[ki], (G, H), minval=-k, maxval=k,
                                  dtype=jnp.float32); ki += 1
        b_ih = jax.random.uniform(keys[ki], (G,), minval=-k, maxval=k,
                                  dtype=jnp.float32); ki += 1
        b_hh = jax.random.uniform(keys[ki], (G,), minval=-k, maxval=k,
                                  dtype=jnp.float32); ki += 1
        wx_t = jnp.transpose(w_ih)                               # (d_in, 4H)
        if layer > 0:
            wx_t = jnp.pad(wx_t, ((0, G - H), (0, 0)))           # zero-pad contraction dim
        whh_t = jnp.pad(jnp.transpose(w_hh), ((0, G - H), (0, 0)))  # (4H, 4H)
        params["lstm"].append((wx_t, whh_t, (b_ih + b_hh)[None, :]))

    # BatchNorm1d(hidden_shape): weight=1, bias=0 at init.
    params["bn"] = (jnp.ones((1, H), jnp.float32), jnp.zeros((1, H), jnp.float32))

    # Linear(hidden_shape, out_shape)
    w_fc = jax.random.uniform(keys[ki], (out_shape, H), minval=-k, maxval=k,
                              dtype=jnp.float32); ki += 1
    b_fc = jax.random.uniform(keys[ki], (out_shape,), minval=-k, maxval=k,
                              dtype=jnp.float32); ki += 1
    params["fc"] = (jnp.transpose(w_fc), b_fc[None, :])
    return params


# ----------------------------------------------------------------------------
# Pure numpy (float64) reference of the PyTorch forward, for a gross-error check
# ----------------------------------------------------------------------------
def reference_forward_np(x, params, in_shape, hidden_shape, lstm_layers):
    H = hidden_shape
    x = np.asarray(x, np.float64)
    B = x.shape[0]
    seq = x.reshape(B, -1)
    T = seq.shape[1] // in_shape
    inp = seq.reshape(B, T, in_shape)

    def sigmoid(z):
        return 1.0 / (1.0 + np.exp(-z))

    for layer in range(lstm_layers):
        wx_t, whh_t, b = [np.asarray(a, np.float64) for a in params["lstm"][layer]]
        d_in = inp.shape[-1]
        wx = wx_t[:d_in]          # un-pad (padding rows are zero)
        whh = whh_t[:H]
        h = np.zeros((B, H)); c = np.zeros((B, H))
        outs = []
        for t in range(T):
            gates = inp[:, t, :] @ wx + h @ whh + b
            i = sigmoid(gates[:, 0 * H:1 * H])
            f = sigmoid(gates[:, 1 * H:2 * H])
            g = np.tanh(gates[:, 2 * H:3 * H])
            o = sigmoid(gates[:, 3 * H:4 * H])
            c = f * c + i * g
            h = o * np.tanh(c)
            outs.append(h)
        inp = np.stack(outs, axis=1)

    h_last = inp[:, -1, :]
    gamma, beta = [np.asarray(a, np.float64) for a in params["bn"]]
    wfc, bfc = [np.asarray(a, np.float64) for a in params["fc"]]
    mean = h_last.mean(axis=0, keepdims=True)
    var = ((h_last - mean) ** 2).mean(axis=0, keepdims=True)
    hn = (h_last - mean) / np.sqrt(var + 1e-5)
    hn = hn * gamma + beta
    return hn @ wfc + bfc


if __name__ == "__main__":
    # Shapes consistent with the module: in_shape=4 features per "row", out_shape=3,
    # hidden=32, 2 LSTM layers; input actigraphy signal (B=4, 1, L=32) -> T=8.
    in_shape, out_shape, hidden_shape, lstm_layers = 4, 3, 32, 2
    B, L = 4, 32

    key = jax.random.PRNGKey(0)
    k_param, k_x = jax.random.split(key)
    params = init_params(k_param, in_shape, out_shape, hidden_shape, lstm_layers)
    x = jax.random.normal(k_x, (B, 1, L), dtype=jnp.float32)

    out = lstm_model_forward(x, params, in_shape=in_shape, out_shape=out_shape,
                             hidden_shape=hidden_shape, lstm_layers=lstm_layers)
    out = jax.block_until_ready(out)
    assert out.shape == (B, out_shape), out.shape

    # Gross-error check (gate order / lane alignment / padding), loose tolerance so
    # MXU-vs-float64 rounding is irrelevant.
    ref = reference_forward_np(x, params, in_shape, hidden_shape, lstm_layers)
    np.testing.assert_allclose(np.asarray(out, np.float64), ref, rtol=5e-2, atol=5e-2)

    print("KERNEL_OK")
</pallas_src>

<mosaic_0001>
module attributes {stable_mosaic.version = 11 : i64} {
  func.func @fused_lstm_kernel(%arg0: memref<64x4xf32, #tpu.memory_space<vmem>>, %arg1: memref<4x128xf32, #tpu.memory_space<vmem>>, %arg2: memref<128x128xf32, #tpu.memory_space<vmem>>, %arg3: memref<1x128xf32, #tpu.memory_space<vmem>>, %arg4: memref<128x128xf32, #tpu.memory_space<vmem>>, %arg5: memref<128x128xf32, #tpu.memory_space<vmem>>, %arg6: memref<1x128xf32, #tpu.memory_space<vmem>>, %arg7: memref<1x32xf32, #tpu.memory_space<vmem>>, %arg8: memref<1x32xf32, #tpu.memory_space<vmem>>, %arg9: memref<32x3xf32, #tpu.memory_space<vmem>>, %arg10: memref<1x3xf32, #tpu.memory_space<vmem>>, %arg11: memref<4x3xf32, #tpu.memory_space<vmem>>, %arg12: memref<64x128xf32, #tpu.memory_space<vmem>>, %arg13: memref<64x128xf32, #tpu.memory_space<vmem>>, %arg14: memref<8x128xf32, #tpu.memory_space<vmem>>, %arg15: memref<8x128xf32, #tpu.memory_space<vmem>>) attributes {dimension_semantics = [], scalar_prefetch = 0 : i64, scratch_operands = 4 : i64, tpu.core_type = #tpu.core_type<tc>} {
    %c0 = arith.constant 0 : index
    %c0_0 = arith.constant 0 : index
    %0 = vector.load %arg0[%c0, %c0_0] : memref<64x4xf32, #tpu.memory_space<vmem>>, vector<64x4xf32>
    %c0_1 = arith.constant 0 : index
    %c0_2 = arith.constant 0 : index
    %1 = vector.load %arg1[%c0_1, %c0_2] : memref<4x128xf32, #tpu.memory_space<vmem>>, vector<4x128xf32>
    %cst = arith.constant dense<0.000000e+00> : vector<64x128xf32>
    %2 = tpu.matmul %0, %1, %cst {dimension_numbers = #tpu.dot_dimension_numbers<[1], [0], [0], [1], [0, 0, 1, 1], [], []>} : vector<64x4xf32>, vector<4x128xf32>, vector<64x128xf32> -> vector<64x128xf32>
    %c0_3 = arith.constant 0 : index
    %c0_4 = arith.constant 0 : index
    %3 = vector.load %arg3[%c0_3, %c0_4] : memref<1x128xf32, #tpu.memory_space<vmem>>, vector<1x128xf32>
    %4 = vector.broadcast %3 : vector<1x128xf32> to vector<64x128xf32>
    %5 = arith.addf %2, %4 : vector<64x128xf32>
    %c0_5 = arith.constant 0 : index
    %c0_6 = arith.constant 0 : index
    %6 = vector.load %arg12[%c0_5, %c0_6] : memref<64x128xf32, #tpu.memory_space<vmem>>, vector<64x128xf32>
    tpu.vector_store %arg12[%c0_5, %c0_6], %5 {strides = array<i32>} : memref<64x128xf32, #tpu.memory_space<vmem>>, vector<64x128xf32>,
    %c0_7 = arith.constant 0 : index
    %c0_8 = arith.constant 0 : index
    %7 = vector.load %arg2[%c0_7, %c0_8] : memref<128x128xf32, #tpu.memory_space<vmem>>, vector<128x128xf32>
    %cst_9 = arith.constant 0.000000e+00 : f32
    %8 = vector.broadcast %cst_9 : f32 to vector<8x128xf32>
    %c0_10 = arith.constant 0 : index
    %c0_11 = arith.constant 0 : index
    %9 = vector.load %arg14[%c0_10, %c0_11] : memref<8x128xf32, #tpu.memory_space<vmem>>, vector<8x128xf32>
    tpu.vector_store %arg14[%c0_10, %c0_11], %8 {strides = array<i32>} : memref<8x128xf32, #tpu.memory_space<vmem>>, vector<8x128xf32>,
    %cst_12 = arith.constant 0.000000e+00 : f32
    %10 = vector.broadcast %cst_12 : f32 to vector<8x128xf32>
    %c0_13 = arith.constant 0 : index
    %c0_14 = arith.constant 0 : index
    %11 = vector.load %arg15[%c0_13, %c0_14] : memref<8x128xf32, #tpu.memory_space<vmem>>, vector<8x128xf32>
    tpu.vector_store %arg15[%c0_13, %c0_14], %10 {strides = array<i32>} : memref<8x128xf32, #tpu.memory_space<vmem>>, vector<8x128xf32>,
    %c0_i32 = arith.constant 0 : i32
    %c8_i32 = arith.constant 8 : i32
    %12 = arith.muli %c0_i32, %c8_i32 : i32
    %13 = tpu.assume_multiple %12, 8 : i32
    %14 = arith.index_cast %13 : i32 to index
    %c0_15 = arith.constant 0 : index
    %15 = vector.load %arg12[%14, %c0_15] : memref<64x128xf32, #tpu.memory_space<vmem>>, vector<8x128xf32>
    %c0_16 = arith.constant 0 : index
    %c0_17 = arith.constant 0 : index
    %16 = vector.load %arg14[%c0_16, %c0_17] : memref<8x128xf32, #tpu.memory_space<vmem>>, vector<8x128xf32>
    %cst_18 = arith.constant dense<0.000000e+00> : vector<8x128xf32>
    %17 = tpu.matmul %16, %7, %cst_18 {dimension_numbers = #tpu.dot_dimension_numbers<[1], [0], [0], [1], [0, 0, 1, 1], [], []>} : vector<8x128xf32>, vector<128x128xf32>, vector<8x128xf32> -> vector<8x128xf32>
    %18 = arith.addf %15, %17 : vector<8x128xf32>
    %19 = arith.negf %18 : vector<8x128xf32>
    %20 = math.exp %19 : vector<8x128xf32>
    %cst_19 = arith.constant 1.000000e+00 : f32
    %21 = vector.broadcast %cst_19 : f32 to vector<8x128xf32>
    %22 = arith.addf %21, %20 : vector<8x128xf32>
    %23 = arith.divf %21, %22 : vector<8x128xf32>
    %24 = math.tanh %18 : vector<8x128xf32>
    %c96_i32 = arith.constant 96 : i32
    %25 = tpu.dynamic_rotate %23 by %c96_i32 dim 1 : vector<8x128xf32>, i32 -> vector<8x128xf32>
    %c64_i32 = arith.constant 64 : i32
    %26 = tpu.dynamic_rotate %24 by %c64_i32 dim 1 : vector<8x128xf32>, i32 -> vector<8x128xf32>
    %c32_i32 = arith.constant 32 : i32
    %27 = tpu.dynamic_rotate %23 by %c32_i32 dim 1 : vector<8x128xf32>, i32 -> vector<8x128xf32>
    %c0_20 = arith.constant 0 : index
    %c0_21 = arith.constant 0 : index
    %28 = vector.load %arg15[%c0_20, %c0_21] : memref<8x128xf32, #tpu.memory_space<vmem>>, vector<8x128xf32>
    %29 = arith.mulf %25, %28 : vector<8x128xf32>
    %30 = arith.mulf %23, %26 : vector<8x128xf32>
    %31 = arith.addf %29, %30 : vector<8x128xf32>
    %32 = math.tanh %31 : vector<8x128xf32>
    %33 = arith.mulf %27, %32 : vector<8x128xf32>
    %c0_22 = arith.constant 0 : index
    %c0_23 = arith.constant 0 : index
    %34 = vector.load %arg15[%c0_22, %c0_23] : memref<8x128xf32, #tpu.memory_space<vmem>>, vector<8x128xf32>
    tpu.vector_store %arg15[%c0_22, %c0_23], %31 {strides = array<i32>} : memref<8x128xf32, #tpu.memory_space<vmem>>, vector<8x128xf32>,
    %c0_24 = arith.constant 0 : index
    %c0_25 = arith.constant 0 : index
    %35 = vector.load %arg14[%c0_24, %c0_25] : memref<8x128xf32, #tpu.memory_space<vmem>>, vector<8x128xf32>
    tpu.vector_store %arg14[%c0_24, %c0_25], %33 {strides = array<i32>} : memref<8x128xf32, #tpu.memory_space<vmem>>, vector<8x128xf32>,
    %36 = arith.index_cast %13 : i32 to index
    %c0_26 = arith.constant 0 : index
    %37 = vector.load %arg13[%36, %c0_26] : memref<64x128xf32, #tpu.memory_space<vmem>>, vector<8x128xf32>
    tpu.vector_store %arg13[%36, %c0_26], %33 {strides = array<i32>} : memref<64x128xf32, #tpu.memory_space<vmem>>, vector<8x128xf32>,
    %c1_i32 = arith.constant 1 : i32
    %c8_i32_27 = arith.constant 8 : i32
    %38 = arith.muli %c1_i32, %c8_i32_27 : i32
    %39 = tpu.assume_multiple %38, 8 : i32
    %40 = arith.index_cast %39 : i32 to index
    %c0_28 = arith.constant 0 : index
    %41 = vector.load %arg12[%40, %c0_28] : memref<64x128xf32, #tpu.memory_space<vmem>>, vector<8x128xf32>
    %c0_29 = arith.constant 0 : index
    %c0_30 = arith.constant 0 : index
    %42 = vector.load %arg14[%c0_29, %c0_30] : memref<8x128xf32, #tpu.memory_space<vmem>>, vector<8x128xf32>
    %cst_31 = arith.constant dense<0.000000e+00> : vector<8x128xf32>
    %43 = tpu.matmul %42, %7, %cst_31 {dimension_numbers = #tpu.dot_dimension_numbers<[1], [0], [0], [1], [0, 0, 1, 1], [], []>} : vector<8x128xf32>, vector<128x128xf32>, vector<8x128xf32> -> vector<8x128xf32>
    %44 = arith.addf %41, %43 : vector<8x128xf32>
    %45 = arith.negf %44 : vector<8x128xf32>
    %46 = math.exp %45 : vector<8x128xf32>
    %cst_32 = arith.constant 1.000000e+00 : f32
    %47 = vector.broadcast %cst_32 : f32 to vector<8x128xf32>
    %48 = arith.addf %47, %46 : vector<8x128xf32>
    %49 = arith.divf %47, %48 : vector<8x128xf32>
    %50 = math.tanh %44 : vector<8x128xf32>
    %c96_i32_33 = arith.constant 96 : i32
    %51 = tpu.dynamic_rotate %49 by %c96_i32_33 dim 1 : vector<8x128xf32>, i32 -> vector<8x128xf32>
    %c64_i32_34 = arith.constant 64 : i32
    %52 = tpu.dynamic_rotate %50 by %c64_i32_34 dim 1 : vector<8x128xf32>, i32 -> vector<8x128xf32>
    %c32_i32_35 = arith.constant 32 : i32
    %53 = tpu.dynamic_rotate %49 by %c32_i32_35 dim 1 : vector<8x128xf32>, i32 -> vector<8x128xf32>
    %c0_36 = arith.constant 0 : index
    %c0_37 = arith.constant 0 : index
    %54 = vector.load %arg15[%c0_36, %c0_37] : memref<8x128xf32, #tpu.memory_space<vmem>>, vector<8x128xf32>
    %55 = arith.mulf %51, %54 : vector<8x128xf32>
    %56 = arith.mulf %49, %52 : vector<8x128xf32>
    %57 = arith.addf %55, %56 : vector<8x128xf32>
    %58 = math.tanh %57 : vector<8x128xf32>
    %59 = arith.mulf %53, %58 : vector<8x128xf32>
    %c0_38 = arith.constant 0 : index
    %c0_39 = arith.constant 0 : index
    %60 = vector.load %arg15[%c0_38, %c0_39] : memref<8x128xf32, #tpu.memory_space<vmem>>, vector<8x128xf32>
    tpu.vector_store %arg15[%c0_38, %c0_39], %57 {strides = array<i32>} : memref<8x128xf32, #tpu.memory_space<vmem>>, vector<8x128xf32>,
    %c0_40 = arith.constant 0 : index
    %c0_41 = arith.constant 0 : index
    %61 = vector.load %arg14[%c0_40, %c0_41] : memref<8x128xf32, #tpu.memory_space<vmem>>, vector<8x128xf32>
    tpu.vector_store %arg14[%c0_40, %c0_41], %59 {strides = array<i32>} : memref<8x128xf32, #tpu.memory_space<vmem>>, vector<8x128xf32>,
    %62 = arith.index_cast %39 : i32 to index
    %c0_42 = arith.constant 0 : index
    %63 = vector.load %arg13[%62, %c0_42] : memref<64x128xf32, #tpu.memory_space<vmem>>, vector<8x128xf32>
    tpu.vector_store %arg13[%62, %c0_42], %59 {strides = array<i32>} : memref<64x128xf32, #tpu.memory_space<vmem>>, vector<8x128xf32>,
    %c2_i32 = arith.constant 2 : i32
    %c8_i32_43 = arith.constant 8 : i32
    %64 = arith.muli %c2_i32, %c8_i32_43 : i32
    %65 = tpu.assume_multiple %64, 8 : i32
    %66 = arith.index_cast %65 : i32 to index
    %c0_44 = arith.constant 0 : index
    %67 = vector.load %arg12[%66, %c0_44] : memref<64x128xf32, #tpu.memory_space<vmem>>, vector<8x128xf32>
    %c0_45 = arith.constant 0 : index
    %c0_46 = arith.constant 0 : index
    %68 = vector.load %arg14[%c0_45, %c0_46] : memref<8x128xf32, #tpu.memory_space<vmem>>, vector<8x128xf32>
    %cst_47 = arith.constant dense<0.000000e+00> : vector<8x128xf32>
    %69 = tpu.matmul %68, %7, %cst_47 {dimension_numbers = #tpu.dot_dimension_numbers<[1], [0], [0], [1], [0, 0, 1, 1], [], []>} : vector<8x128xf32>, vector<128x128xf32>, vector<8x128xf32> -> vector<8x128xf32>
    %70 = arith.addf %67, %69 : vector<8x128xf32>
    %71 = arith.negf %70 : vector<8x128xf32>
    %72 = math.exp %71 : vector<8x128xf32>
    %cst_48 = arith.constant 1.000000e+00 : f32
    %73 = vector.broadcast %cst_48 : f32 to vector<8x128xf32>
    %74 = arith.addf %73, %72 : vector<8x128xf32>
    %75 = arith.divf %73, %74 : vector<8x128xf32>
    %76 = math.tanh %70 : vector<8x128xf32>
    %c96_i32_49 = arith.constant 96 : i32
    %77 = tpu.dynamic_rotate %75 by %c96_i32_49 dim 1 : vector<8x128xf32>, i32 -> vector<8x128xf32>
    %c64_i32_50 = arith.constant 64 : i32
    %78 = tpu.dynamic_rotate %76 by %c64_i32_50 dim 1 : vector<8x128xf32>, i32 -> vector<8x128xf32>
    %c32_i32_51 = arith.constant 32 : i32
    %79 = tpu.dynamic_rotate %75 by %c32_i32_51 dim 1 : vector<8x128xf32>, i32 -> vector<8x128xf32>
    %c0_52 = arith.constant 0 : index
    %c0_53 = arith.constant 0 : index
    %80 = vector.load %arg15[%c0_52, %c0_53] : memref<8x128xf32, #tpu.memory_space<vmem>>, vector<8x128xf32>
    %81 = arith.mulf %77, %80 : vector<8x128xf32>
    %82 = arith.mulf %75, %78 : vector<8x128xf32>
    %83 = arith.addf %81, %82 : vector<8x128xf32>
    %84 = math.tanh %83 : vector<8x128xf32>
    %85 = arith.mulf %79, %84 : vector<8x128xf32>
    %c0_54 = arith.constant 0 : index
    %c0_55 = arith.constant 0 : index
    %86 = vector.load %arg15[%c0_54, %c0_55] : memref<8x128xf32, #tpu.memory_space<vmem>>, vector<8x128xf32>
    tpu.vector_store %arg15[%c0_54, %c0_55], %83 {strides = array<i32>} : memref<8x128xf32, #tpu.memory_space<vmem>>, vector<8x128xf32>,
    %c0_56 = arith.constant 0 : index
    %c0_57 = arith.constant 0 : index
    %87 = vector.load %arg14[%c0_56, %c0_57] : memref<8x128xf32, #tpu.memory_space<vmem>>, vector<8x128xf32>
    tpu.vector_store %arg14[%c0_56, %c0_57], %85 {strides = array<i32>} : memref<8x128xf32, #tpu.memory_space<vmem>>, vector<8x128xf32>,
    %88 = arith.index_cast %65 : i32 to index
    %c0_58 = arith.constant 0 : index
    %89 = vector.load %arg13[%88, %c0_58] : memref<64x128xf32, #tpu.memory_space<vmem>>, vector<8x128xf32>
    tpu.vector_store %arg13[%88, %c0_58], %85 {strides = array<i32>} : memref<64x128xf32, #tpu.memory_space<vmem>>, vector<8x128xf32>,
    %c3_i32 = arith.constant 3 : i32
    %c8_i32_59 = arith.constant 8 : i32
    %90 = arith.muli %c3_i32, %c8_i32_59 : i32
    %91 = tpu.assume_multiple %90, 8 : i32
    %92 = arith.index_cast %91 : i32 to index
    %c0_60 = arith.constant 0 : index
    %93 = vector.load %arg12[%92, %c0_60] : memref<64x128xf32, #tpu.memory_space<vmem>>, vector<8x128xf32>
    %c0_61 = arith.constant 0 : index
    %c0_62 = arith.constant 0 : index
    %94 = vector.load %arg14[%c0_61, %c0_62] : memref<8x128xf32, #tpu.memory_space<vmem>>, vector<8x128xf32>
    %cst_63 = arith.constant dense<0.000000e+00> : vector<8x128xf32>
    %95 = tpu.matmul %94, %7, %cst_63 {dimension_numbers = #tpu.dot_dimension_numbers<[1], [0], [0], [1], [0, 0, 1, 1], [], []>} : vector<8x128xf32>, vector<128x128xf32>, vector<8x128xf32> -> vector<8x128xf32>
    %96 = arith.addf %93, %95 : vector<8x128xf32>
    %97 = arith.negf %96 : vector<8x128xf32>
    %98 = math.exp %97 : vector<8x128xf32>
    %cst_64 = arith.constant 1.000000e+00 : f32
    %99 = vector.broadcast %cst_64 : f32 to vector<8x128xf32>
    %100 = arith.addf %99, %98 : vector<8x128xf32>
    %101 = arith.divf %99, %100 : vector<8x128xf32>
    %102 = math.tanh %96 : vector<8x128xf32>
    %c96_i32_65 = arith.constant 96 : i32
    %103 = tpu.dynamic_rotate %101 by %c96_i32_65 dim 1 : vector<8x128xf32>, i32 -> vector<8x128xf32>
    %c64_i32_66 = arith.constant 64 : i32
    %104 = tpu.dynamic_rotate %102 by %c64_i32_66 dim 1 : vector<8x128xf32>, i32 -> vector<8x128xf32>
    %c32_i32_67 = arith.constant 32 : i32
    %105 = tpu.dynamic_rotate %101 by %c32_i32_67 dim 1 : vector<8x128xf32>, i32 -> vector<8x128xf32>
    %c0_68 = arith.constant 0 : index
    %c0_69 = arith.constant 0 : index
    %106 = vector.load %arg15[%c0_68, %c0_69] : memref<8x128xf32, #tpu.memory_space<vmem>>, vector<8x128xf32>
    %107 = arith.mulf %103, %106 : vector<8x128xf32>
    %108 = arith.mulf %101, %104 : vector<8x128xf32>
    %109 = arith.addf %107, %108 : vector<8x128xf32>
    %110 = math.tanh %109 : vector<8x128xf32>
    %111 = arith.mulf %105, %110 : vector<8x128xf32>
    %c0_70 = arith.constant 0 : index
    %c0_71 = arith.constant 0 : index
    %112 = vector.load %arg15[%c0_70, %c0_71] : memref<8x128xf32, #tpu.memory_space<vmem>>, vector<8x128xf32>
    tpu.vector_store %arg15[%c0_70, %c0_71], %109 {strides = array<i32>} : memref<8x128xf32, #tpu.memory_space<vmem>>, vector<8x128xf32>,
    %c0_72 = arith.constant 0 : index
    %c0_73 = arith.constant 0 : index
    %113 = vector.load %arg14[%c0_72, %c0_73] : memref<8x128xf32, #tpu.memory_space<vmem>>, vector<8x128xf32>
    tpu.vector_store %arg14[%c0_72, %c0_73], %111 {strides = array<i32>} : memref<8x128xf32, #tpu.memory_space<vmem>>, vector<8x128xf32>,
    %114 = arith.index_cast %91 : i32 to index
    %c0_74 = arith.constant 0 : index
    %115 = vector.load %arg13[%114, %c0_74] : memref<64x128xf32, #tpu.memory_space<vmem>>, vector<8x128xf32>
    tpu.vector_store %arg13[%114, %c0_74], %111 {strides = array<i32>} : memref<64x128xf32, #tpu.memory_space<vmem>>, vector<8x128xf32>,
    %c4_i32 = arith.constant 4 : i32
    %c8_i32_75 = arith.constant 8 : i32
    %116 = arith.muli %c4_i32, %c8_i32_75 : i32
    %117 = tpu.assume_multiple %116, 8 : i32
    %118 = arith.index_cast %117 : i32 to index
    %c0_76 = arith.constant 0 : index
    %119 = vector.load %arg12[%118, %c0_76] : memref<64x128xf32, #tpu.memory_space<vmem>>, vector<8x128xf32>
    %c0_77 = arith.constant 0 : index
    %c0_78 = arith.constant 0 : index
    %120 = vector.load %arg14[%c0_77, %c0_78] : memref<8x128xf32, #tpu.memory_space<vmem>>, vector<8x128xf32>
    %cst_79 = arith.constant dense<0.000000e+00> : vector<8x128xf32>
    %121 = tpu.matmul %120, %7, %cst_79 {dimension_numbers = #tpu.dot_dimension_numbers<[1], [0], [0], [1], [0, 0, 1, 1], [], []>} : vector<8x128xf32>, vector<128x128xf32>, vector<8x128xf32> -> vector<8x128xf32>
    %122 = arith.addf %119, %121 : vector<8x128xf32>
    %123 = arith.negf %122 : vector<8x128xf32>
    %124 = math.exp %123 : vector<8x128xf32>
    %cst_80 = arith.constant 1.000000e+00 : f32
    %125 = vector.broadcast %cst_80 : f32 to vector<8x128xf32>
    %126 = arith.addf %125, %124 : vector<8x128xf32>
    %127 = arith.divf %125, %126 : vector<8x128xf32>
    %128 = math.tanh %122 : vector<8x128xf32>
    %c96_i32_81 = arith.constant 96 : i32
    %129 = tpu.dynamic_rotate %127 by %c96_i32_81 dim 1 : vector<8x128xf32>, i32 -> vector<8x128xf32>
    %c64_i32_82 = arith.constant 64 : i32
    %130 = tpu.dynamic_rotate %128 by %c64_i32_82 dim 1 : vector<8x128xf32>, i32 -> vector<8x128xf32>
    %c32_i32_83 = arith.constant 32 : i32
    %131 = tpu.dynamic_rotate %127 by %c32_i32_83 dim 1 : vector<8x128xf32>, i32 -> vector<8x128xf32>
    %c0_84 = arith.constant 0 : index
    %c0_85 = arith.constant 0 : index
    %132 = vector.load %arg15[%c0_84, %c0_85] : memref<8x128xf32, #tpu.memory_space<vmem>>, vector<8x128xf32>
    %133 = arith.mulf %129, %132 : vector<8x128xf32>
    %134 = arith.mulf %127, %130 : vector<8x128xf32>
    %135 = arith.addf %133, %134 : vector<8x128xf32>
    %136 = math.tanh %135 : vector<8x128xf32>
    %137 = arith.mulf %131, %136 : vector<8x128xf32>
    %c0_86 = arith.constant 0 : index
    %c0_87 = arith.constant 0 : index
    %138 = vector.load %arg15[%c0_86, %c0_87] : memref<8x128xf32, #tpu.memory_space<vmem>>, vector<8x128xf32>
    tpu.vector_store %arg15[%c0_86, %c0_87], %135 {strides = array<i32>} : memref<8x128xf32, #tpu.memory_space<vmem>>, vector<8x128xf32>,
    %c0_88 = arith.constant 0 : index
    %c0_89 = arith.constant 0 : index
    %139 = vector.load %arg14[%c0_88, %c0_89] : memref<8x128xf32, #tpu.memory_space<vmem>>, vector<8x128xf32>
    tpu.vector_store %arg14[%c0_88, %c0_89], %137 {strides = array<i32>} : memref<8x128xf32, #tpu.memory_space<vmem>>, vector<8x128xf32>,
    %140 = arith.index_cast %117 : i32 to index
    %c0_90 = arith.constant 0 : index
    %141 = vector.load %arg13[%140, %c0_90] : memref<64x128xf32, #tpu.memory_space<vmem>>, vector<8x128xf32>
    tpu.vector_store %arg13[%140, %c0_90], %137 {strides = array<i32>} : memref<64x128xf32, #tpu.memory_space<vmem>>, vector<8x128xf32>,
    %c5_i32 = arith.constant 5 : i32
    %c8_i32_91 = arith.constant 8 : i32
    %142 = arith.muli %c5_i32, %c8_i32_91 : i32
    %143 = tpu.assume_multiple %142, 8 : i32
    %144 = arith.index_cast %143 : i32 to index
    %c0_92 = arith.constant 0 : index
    %145 = vector.load %arg12[%144, %c0_92] : memref<64x128xf32, #tpu.memory_space<vmem>>, vector<8x128xf32>
    %c0_93 = arith.constant 0 : index
    %c0_94 = arith.constant 0 : index
    %146 = vector.load %arg14[%c0_93, %c0_94] : memref<8x128xf32, #tpu.memory_space<vmem>>, vector<8x128xf32>
    %cst_95 = arith.constant dense<0.000000e+00> : vector<8x128xf32>
    %147 = tpu.matmul %146, %7, %cst_95 {dimension_numbers = #tpu.dot_dimension_numbers<[1], [0], [0], [1], [0, 0, 1, 1], [], []>} : vector<8x128xf32>, vector<128x128xf32>, vector<8x128xf32> -> vector<8x128xf32>
    %148 = arith.addf %145, %147 : vector<8x128xf32>
    %149 = arith.negf %148 : vector<8x128xf32>
    %150 = math.exp %149 : vector<8x128xf32>
    %cst_96 = arith.constant 1.000000e+00 : f32
    %151 = vector.broadcast %cst_96 : f32 to vector<8x128xf32>
    %152 = arith.addf %151, %150 : vector<8x128xf32>
    %153 = arith.divf %151, %152 : vector<8x128xf32>
    %154 = math.tanh %148 : vector<8x128xf32>
    %c96_i32_97 = arith.constant 96 : i32
    %155 = tpu.dynamic_rotate %153 by %c96_i32_97 dim 1 : vector<8x128xf32>, i32 -> vector<8x128xf32>
    %c64_i32_98 = arith.constant 64 : i32
    %156 = tpu.dynamic_rotate %154 by %c64_i32_98 dim 1 : vector<8x128xf32>, i32 -> vector<8x128xf32>
    %c32_i32_99 = arith.constant 32 : i32
    %157 = tpu.dynamic_rotate %153 by %c32_i32_99 dim 1 : vector<8x128xf32>, i32 -> vector<8x128xf32>
    %c0_100 = arith.constant 0 : index
    %c0_101 = arith.constant 0 : index
    %158 = vector.load %arg15[%c0_100, %c0_101] : memref<8x128xf32, #tpu.memory_space<vmem>>, vector<8x128xf32>
    %159 = arith.mulf %155, %158 : vector<8x128xf32>
    %160 = arith.mulf %153, %156 : vector<8x128xf32>
    %161 = arith.addf %159, %160 : vector<8x128xf32>
    %162 = math.tanh %161 : vector<8x128xf32>
    %163 = arith.mulf %157, %162 : vector<8x128xf32>
    %c0_102 = arith.constant 0 : index
    %c0_103 = arith.constant 0 : index
    %164 = vector.load %arg15[%c0_102, %c0_103] : memref<8x128xf32, #tpu.memory_space<vmem>>, vector<8x128xf32>
    tpu.vector_store %arg15[%c0_102, %c0_103], %161 {strides = array<i32>} : memref<8x128xf32, #tpu.memory_space<vmem>>, vector<8x128xf32>,
    %c0_104 = arith.constant 0 : index
    %c0_105 = arith.constant 0 : index
    %165 = vector.load %arg14[%c0_104, %c0_105] : memref<8x128xf32, #tpu.memory_space<vmem>>, vector<8x128xf32>
    tpu.vector_store %arg14[%c0_104, %c0_105], %163 {strides = array<i32>} : memref<8x128xf32, #tpu.memory_space<vmem>>, vector<8x128xf32>,
    %166 = arith.index_cast %143 : i32 to index
    %c0_106 = arith.constant 0 : index
    %167 = vector.load %arg13[%166, %c0_106] : memref<64x128xf32, #tpu.memory_space<vmem>>, vector<8x128xf32>
    tpu.vector_store %arg13[%166, %c0_106], %163 {strides = array<i32>} : memref<64x128xf32, #tpu.memory_space<vmem>>, vector<8x128xf32>,
    %c6_i32 = arith.constant 6 : i32
    %c8_i32_107 = arith.constant 8 : i32
    %168 = arith.muli %c6_i32, %c8_i32_107 : i32
    %169 = tpu.assume_multiple %168, 8 : i32
    %170 = arith.index_cast %169 : i32 to index
    %c0_108 = arith.constant 0 : index
    %171 = vector.load %arg12[%170, %c0_108] : memref<64x128xf32, #tpu.memory_space<vmem>>, vector<8x128xf32>
    %c0_109 = arith.constant 0 : index
    %c0_110 = arith.constant 0 : index
    %172 = vector.load %arg14[%c0_109, %c0_110] : memref<8x128xf32, #tpu.memory_space<vmem>>, vector<8x128xf32>
    %cst_111 = arith.constant dense<0.000000e+00> : vector<8x128xf32>
    %173 = tpu.matmul %172, %7, %cst_111 {dimension_numbers = #tpu.dot_dimension_numbers<[1], [0], [0], [1], [0, 0, 1, 1], [], []>} : vector<8x128xf32>, vector<128x128xf32>, vector<8x128xf32> -> vector<8x128xf32>
    %174 = arith.addf %171, %173 : vector<8x128xf32>
    %175 = arith.negf %174 : vector<8x128xf32>
    %176 = math.exp %175 : vector<8x128xf32>
    %cst_112 = arith.constant 1.000000e+00 : f32
    %177 = vector.broadcast %cst_112 : f32 to vector<8x128xf32>
    %178 = arith.addf %177, %176 : vector<8x128xf32>
    %179 = arith.divf %177, %178 : vector<8x128xf32>
    %180 = math.tanh %174 : vector<8x128xf32>
    %c96_i32_113 = arith.constant 96 : i32
    %181 = tpu.dynamic_rotate %179 by %c96_i32_113 dim 1 : vector<8x128xf32>, i32 -> vector<8x128xf32>
    %c64_i32_114 = arith.constant 64 : i32
    %182 = tpu.dynamic_rotate %180 by %c64_i32_114 dim 1 : vector<8x128xf32>, i32 -> vector<8x128xf32>
    %c32_i32_115 = arith.constant 32 : i32
    %183 = tpu.dynamic_rotate %179 by %c32_i32_115 dim 1 : vector<8x128xf32>, i32 -> vector<8x128xf32>
    %c0_116 = arith.constant 0 : index
    %c0_117 = arith.constant 0 : index
    %184 = vector.load %arg15[%c0_116, %c0_117] : memref<8x128xf32, #tpu.memory_space<vmem>>, vector<8x128xf32>
    %185 = arith.mulf %181, %184 : vector<8x128xf32>
    %186 = arith.mulf %179, %182 : vector<8x128xf32>
    %187 = arith.addf %185, %186 : vector<8x128xf32>
    %188 = math.tanh %187 : vector<8x128xf32>
    %189 = arith.mulf %183, %188 : vector<8x128xf32>
    %c0_118 = arith.constant 0 : index
    %c0_119 = arith.constant 0 : index
    %190 = vector.load %arg15[%c0_118, %c0_119] : memref<8x128xf32, #tpu.memory_space<vmem>>, vector<8x128xf32>
    tpu.vector_store %arg15[%c0_118, %c0_119], %187 {strides = array<i32>} : memref<8x128xf32, #tpu.memory_space<vmem>>, vector<8x128xf32>,
    %c0_120 = arith.constant 0 : index
    %c0_121 = arith.constant 0 : index
    %191 = vector.load %arg14[%c0_120, %c0_121] : memref<8x128xf32, #tpu.memory_space<vmem>>, vector<8x128xf32>
    tpu.vector_store %arg14[%c0_120, %c0_121], %189 {strides = array<i32>} : memref<8x128xf32, #tpu.memory_space<vmem>>, vector<8x128xf32>,
    %192 = arith.index_cast %169 : i32 to index
    %c0_122 = arith.constant 0 : index
    %193 = vector.load %arg13[%192, %c0_122] : memref<64x128xf32, #tpu.memory_space<vmem>>, vector<8x128xf32>
    tpu.vector_store %arg13[%192, %c0_122], %189 {strides = array<i32>} : memref<64x128xf32, #tpu.memory_space<vmem>>, vector<8x128xf32>,
    %c7_i32 = arith.constant 7 : i32
    %c8_i32_123 = arith.constant 8 : i32
    %194 = arith.muli %c7_i32, %c8_i32_123 : i32
    %195 = tpu.assume_multiple %194, 8 : i32
    %196 = arith.index_cast %195 : i32 to index
    %c0_124 = arith.constant 0 : index
    %197 = vector.load %arg12[%196, %c0_124] : memref<64x128xf32, #tpu.memory_space<vmem>>, vector<8x128xf32>
    %c0_125 = arith.constant 0 : index
    %c0_126 = arith.constant 0 : index
    %198 = vector.load %arg14[%c0_125, %c0_126] : memref<8x128xf32, #tpu.memory_space<vmem>>, vector<8x128xf32>
    %cst_127 = arith.constant dense<0.000000e+00> : vector<8x128xf32>
    %199 = tpu.matmul %198, %7, %cst_127 {dimension_numbers = #tpu.dot_dimension_numbers<[1], [0], [0], [1], [0, 0, 1, 1], [], []>} : vector<8x128xf32>, vector<128x128xf32>, vector<8x128xf32> -> vector<8x128xf32>
    %200 = arith.addf %197, %199 : vector<8x128xf32>
    %201 = arith.negf %200 : vector<8x128xf32>
    %202 = math.exp %201 : vector<8x128xf32>
    %cst_128 = arith.constant 1.000000e+00 : f32
    %203 = vector.broadcast %cst_128 : f32 to vector<8x128xf32>
    %204 = arith.addf %203, %202 : vector<8x128xf32>
    %205 = arith.divf %203, %204 : vector<8x128xf32>
    %206 = math.tanh %200 : vector<8x128xf32>
    %c96_i32_129 = arith.constant 96 : i32
    %207 = tpu.dynamic_rotate %205 by %c96_i32_129 dim 1 : vector<8x128xf32>, i32 -> vector<8x128xf32>
    %c64_i32_130 = arith.constant 64 : i32
    %208 = tpu.dynamic_rotate %206 by %c64_i32_130 dim 1 : vector<8x128xf32>, i32 -> vector<8x128xf32>
    %c32_i32_131 = arith.constant 32 : i32
    %209 = tpu.dynamic_rotate %205 by %c32_i32_131 dim 1 : vector<8x128xf32>, i32 -> vector<8x128xf32>
    %c0_132 = arith.constant 0 : index
    %c0_133 = arith.constant 0 : index
    %210 = vector.load %arg15[%c0_132, %c0_133] : memref<8x128xf32, #tpu.memory_space<vmem>>, vector<8x128xf32>
    %211 = arith.mulf %207, %210 : vector<8x128xf32>
    %212 = arith.mulf %205, %208 : vector<8x128xf32>
    %213 = arith.addf %211, %212 : vector<8x128xf32>
    %214 = math.tanh %213 : vector<8x128xf32>
    %215 = arith.mulf %209, %214 : vector<8x128xf32>
    %c0_134 = arith.constant 0 : index
    %c0_135 = arith.constant 0 : index
    %216 = vector.load %arg15[%c0_134, %c0_135] : memref<8x128xf32, #tpu.memory_space<vmem>>, vector<8x128xf32>
    tpu.vector_store %arg15[%c0_134, %c0_135], %213 {strides = array<i32>} : memref<8x128xf32, #tpu.memory_space<vmem>>, vector<8x128xf32>,
    %c0_136 = arith.constant 0 : index
    %c0_137 = arith.constant 0 : index
    %217 = vector.load %arg14[%c0_136, %c0_137] : memref<8x128xf32, #tpu.memory_space<vmem>>, vector<8x128xf32>
    tpu.vector_store %arg14[%c0_136, %c0_137], %215 {strides = array<i32>} : memref<8x128xf32, #tpu.memory_space<vmem>>, vector<8x128xf32>,
    %218 = arith.index_cast %195 : i32 to index
    %c0_138 = arith.constant 0 : index
    %219 = vector.load %arg13[%218, %c0_138] : memref<64x128xf32, #tpu.memory_space<vmem>>, vector<8x128xf32>
    tpu.vector_store %arg13[%218, %c0_138], %215 {strides = array<i32>} : memref<64x128xf32, #tpu.memory_space<vmem>>, vector<8x128xf32>,
    %c8_i32_139 = arith.constant 8 : i32
    %c0_140 = arith.constant 0 : index
    %c0_141 = arith.constant 0 : index
    %220 = vector.load %arg13[%c0_140, %c0_141] : memref<64x128xf32, #tpu.memory_space<vmem>>, vector<64x128xf32>
    %c0_142 = arith.constant 0 : index
    %c0_143 = arith.constant 0 : index
    %221 = vector.load %arg4[%c0_142, %c0_143] : memref<128x128xf32, #tpu.memory_space<vmem>>, vector<128x128xf32>
    %cst_144 = arith.constant dense<0.000000e+00> : vector<64x128xf32>
    %222 = tpu.matmul %220, %221, %cst_144 {dimension_numbers = #tpu.dot_dimension_numbers<[1], [0], [0], [1], [0, 0, 1, 1], [], []>} : vector<64x128xf32>, vector<128x128xf32>, vector<64x128xf32> -> vector<64x128xf32>
    %c0_145 = arith.constant 0 : index
    %c0_146 = arith.constant 0 : index
    %223 = vector.load %arg6[%c0_145, %c0_146] : memref<1x128xf32, #tpu.memory_space<vmem>>, vector<1x128xf32>
    %224 = vector.broadcast %223 : vector<1x128xf32> to vector<64x128xf32>
    %225 = arith.addf %222, %224 : vector<64x128xf32>
    %c0_147 = arith.constant 0 : index
    %c0_148 = arith.constant 0 : index
    %226 = vector.load %arg12[%c0_147, %c0_148] : memref<64x128xf32, #tpu.memory_space<vmem>>, vector<64x128xf32>
    tpu.vector_store %arg12[%c0_147, %c0_148], %225 {strides = array<i32>} : memref<64x128xf32, #tpu.memory_space<vmem>>, vector<64x128xf32>,
    %c0_149 = arith.constant 0 : index
    %c0_150 = arith.constant 0 : index
    %227 = vector.load %arg5[%c0_149, %c0_150] : memref<128x128xf32, #tpu.memory_space<vmem>>, vector<128x128xf32>
    %cst_151 = arith.constant 0.000000e+00 : f32
    %228 = vector.broadcast %cst_151 : f32 to vector<8x128xf32>
    %c0_152 = arith.constant 0 : index
    %c0_153 = arith.constant 0 : index
    %229 = vector.load %arg14[%c0_152, %c0_153] : memref<8x128xf32, #tpu.memory_space<vmem>>, vector<8x128xf32>
    tpu.vector_store %arg14[%c0_152, %c0_153], %228 {strides = array<i32>} : memref<8x128xf32, #tpu.memory_space<vmem>>, vector<8x128xf32>,
    %cst_154 = arith.constant 0.000000e+00 : f32
    %230 = vector.broadcast %cst_154 : f32 to vector<8x128xf32>
    %c0_155 = arith.constant 0 : index
    %c0_156 = arith.constant 0 : index
    %231 = vector.load %arg15[%c0_155, %c0_156] : memref<8x128xf32, #tpu.memory_space<vmem>>, vector<8x128xf32>
    tpu.vector_store %arg15[%c0_155, %c0_156], %230 {strides = array<i32>} : memref<8x128xf32, #tpu.memory_space<vmem>>, vector<8x128xf32>,
    %c0_i32_157 = arith.constant 0 : i32
    %c8_i32_158 = arith.constant 8 : i32
    %232 = arith.muli %c0_i32_157, %c8_i32_158 : i32
    %233 = tpu.assume_multiple %232, 8 : i32
    %234 = arith.index_cast %233 : i32 to index
    %c0_159 = arith.constant 0 : index
    %235 = vector.load %arg12[%234, %c0_159] : memref<64x128xf32, #tpu.memory_space<vmem>>, vector<8x128xf32>
    %c0_160 = arith.constant 0 : index
    %c0_161 = arith.constant 0 : index
    %236 = vector.load %arg14[%c0_160, %c0_161] : memref<8x128xf32, #tpu.memory_space<vmem>>, vector<8x128xf32>
    %cst_162 = arith.constant dense<0.000000e+00> : vector<8x128xf32>
    %237 = tpu.matmul %236, %227, %cst_162 {dimension_numbers = #tpu.dot_dimension_numbers<[1], [0], [0], [1], [0, 0, 1, 1], [], []>} : vector<8x128xf32>, vector<128x128xf32>, vector<8x128xf32> -> vector<8x128xf32>
    %238 = arith.addf %235, %237 : vector<8x128xf32>
    %239 = arith.negf %238 : vector<8x128xf32>
    %240 = math.exp %239 : vector<8x128xf32>
    %cst_163 = arith.constant 1.000000e+00 : f32
    %241 = vector.broadcast %cst_163 : f32 to vector<8x128xf32>
    %242 = arith.addf %241, %240 : vector<8x128xf32>
    %243 = arith.divf %241, %242 : vector<8x128xf32>
    %244 = math.tanh %238 : vector<8x128xf32>
    %c96_i32_164 = arith.constant 96 : i32
    %245 = tpu.dynamic_rotate %243 by %c96_i32_164 dim 1 : vector<8x128xf32>, i32 -> vector<8x128xf32>
    %c64_i32_165 = arith.constant 64 : i32
    %246 = tpu.dynamic_rotate %244 by %c64_i32_165 dim 1 : vector<8x128xf32>, i32 -> vector<8x128xf32>
    %c32_i32_166 = arith.constant 32 : i32
    %247 = tpu.dynamic_rotate %243 by %c32_i32_166 dim 1 : vector<8x128xf32>, i32 -> vector<8x128xf32>
    %c0_167 = arith.constant 0 : index
    %c0_168 = arith.constant 0 : index
    %248 = vector.load %arg15[%c0_167, %c0_168] : memref<8x128xf32, #tpu.memory_space<vmem>>, vector<8x128xf32>
    %249 = arith.mulf %245, %248 : vector<8x128xf32>
    %250 = arith.mulf %243, %246 : vector<8x128xf32>
    %251 = arith.addf %249, %250 : vector<8x128xf32>
    %252 = math.tanh %251 : vector<8x128xf32>
    %253 = arith.mulf %247, %252 : vector<8x128xf32>
    %c0_169 = arith.constant 0 : index
    %c0_170 = arith.constant 0 : index
    %254 = vector.load %arg15[%c0_169, %c0_170] : memref<8x128xf32, #tpu.memory_space<vmem>>, vector<8x128xf32>
    tpu.vector_store %arg15[%c0_169, %c0_170], %251 {strides = array<i32>} : memref<8x128xf32, #tpu.memory_space<vmem>>, vector<8x128xf32>,
    %c0_171 = arith.constant 0 : index
    %c0_172 = arith.constant 0 : index
    %255 = vector.load %arg14[%c0_171, %c0_172] : memref<8x128xf32, #tpu.memory_space<vmem>>, vector<8x128xf32>
    tpu.vector_store %arg14[%c0_171, %c0_172], %253 {strides = array<i32>} : memref<8x128xf32, #tpu.memory_space<vmem>>, vector<8x128xf32>,
    %c1_i32_173 = arith.constant 1 : i32
    %c8_i32_174 = arith.constant 8 : i32
    %256 = arith.muli %c1_i32_173, %c8_i32_174 : i32
    %257 = tpu.assume_multiple %256, 8 : i32
    %258 = arith.index_cast %257 : i32 to index
    %c0_175 = arith.constant 0 : index
    %259 = vector.load %arg12[%258, %c0_175] : memref<64x128xf32, #tpu.memory_space<vmem>>, vector<8x128xf32>
    %c0_176 = arith.constant 0 : index
    %c0_177 = arith.constant 0 : index
    %260 = vector.load %arg14[%c0_176, %c0_177] : memref<8x128xf32, #tpu.memory_space<vmem>>, vector<8x128xf32>
    %cst_178 = arith.constant dense<0.000000e+00> : vector<8x128xf32>
    %261 = tpu.matmul %260, %227, %cst_178 {dimension_numbers = #tpu.dot_dimension_numbers<[1], [0], [0], [1], [0, 0, 1, 1], [], []>} : vector<8x128xf32>, vector<128x128xf32>, vector<8x128xf32> -> vector<8x128xf32>
    %262 = arith.addf %259, %261 : vector<8x128xf32>
    %263 = arith.negf %262 : vector<8x128xf32>
    %264 = math.exp %263 : vector<8x128xf32>
    %cst_179 = arith.constant 1.000000e+00 : f32
    %265 = vector.broadcast %cst_179 : f32 to vector<8x128xf32>
    %266 = arith.addf %265, %264 : vector<8x128xf32>
    %267 = arith.divf %265, %266 : vector<8x128xf32>
    %268 = math.tanh %262 : vector<8x128xf32>
    %c96_i32_180 = arith.constant 96 : i32
    %269 = tpu.dynamic_rotate %267 by %c96_i32_180 dim 1 : vector<8x128xf32>, i32 -> vector<8x128xf32>
    %c64_i32_181 = arith.constant 64 : i32
    %270 = tpu.dynamic_rotate %268 by %c64_i32_181 dim 1 : vector<8x128xf32>, i32 -> vector<8x128xf32>
    %c32_i32_182 = arith.constant 32 : i32
    %271 = tpu.dynamic_rotate %267 by %c32_i32_182 dim 1 : vector<8x128xf32>, i32 -> vector<8x128xf32>
    %c0_183 = arith.constant 0 : index
    %c0_184 = arith.constant 0 : index
    %272 = vector.load %arg15[%c0_183, %c0_184] : memref<8x128xf32, #tpu.memory_space<vmem>>, vector<8x128xf32>
    %273 = arith.mulf %269, %272 : vector<8x128xf32>
    %274 = arith.mulf %267, %270 : vector<8x128xf32>
    %275 = arith.addf %273, %274 : vector<8x128xf32>
    %276 = math.tanh %275 : vector<8x128xf32>
    %277 = arith.mulf %271, %276 : vector<8x128xf32>
    %c0_185 = arith.constant 0 : index
    %c0_186 = arith.constant 0 : index
    %278 = vector.load %arg15[%c0_185, %c0_186] : memref<8x128xf32, #tpu.memory_space<vmem>>, vector<8x128xf32>
    tpu.vector_store %arg15[%c0_185, %c0_186], %275 {strides = array<i32>} : memref<8x128xf32, #tpu.memory_space<vmem>>, vector<8x128xf32>,
    %c0_187 = arith.constant 0 : index
    %c0_188 = arith.constant 0 : index
    %279 = vector.load %arg14[%c0_187, %c0_188] : memref<8x128xf32, #tpu.memory_space<vmem>>, vector<8x128xf32>
    tpu.vector_store %arg14[%c0_187, %c0_188], %277 {strides = array<i32>} : memref<8x128xf32, #tpu.memory_space<vmem>>, vector<8x128xf32>,
    %c2_i32_189 = arith.constant 2 : i32
    %c8_i32_190 = arith.constant 8 : i32
    %280 = arith.muli %c2_i32_189, %c8_i32_190 : i32
    %281 = tpu.assume_multiple %280, 8 : i32
    %282 = arith.index_cast %281 : i32 to index
    %c0_191 = arith.constant 0 : index
    %283 = vector.load %arg12[%282, %c0_191] : memref<64x128xf32, #tpu.memory_space<vmem>>, vector<8x128xf32>
    %c0_192 = arith.constant 0 : index
    %c0_193 = arith.constant 0 : index
    %284 = vector.load %arg14[%c0_192, %c0_193] : memref<8x128xf32, #tpu.memory_space<vmem>>, vector<8x128xf32>
    %cst_194 = arith.constant dense<0.000000e+00> : vector<8x128xf32>
    %285 = tpu.matmul %284, %227, %cst_194 {dimension_numbers = #tpu.dot_dimension_numbers<[1], [0], [0], [1], [0, 0, 1, 1], [], []>} : vector<8x128xf32>, vector<128x128xf32>, vector<8x128xf32> -> vector<8x128xf32>
    %286 = arith.addf %283, %285 : vector<8x128xf32>
    %287 = arith.negf %286 : vector<8x128xf32>
    %288 = math.exp %287 : vector<8x128xf32>
    %cst_195 = arith.constant 1.000000e+00 : f32
    %289 = vector.broadcast %cst_195 : f32 to vector<8x128xf32>
    %290 = arith.addf %289, %288 : vector<8x128xf32>
    %291 = arith.divf %289, %290 : vector<8x128xf32>
    %292 = math.tanh %286 : vector<8x128xf32>
    %c96_i32_196 = arith.constant 96 : i32
    %293 = tpu.dynamic_rotate %291 by %c96_i32_196 dim 1 : vector<8x128xf32>, i32 -> vector<8x128xf32>
    %c64_i32_197 = arith.constant 64 : i32
    %294 = tpu.dynamic_rotate %292 by %c64_i32_197 dim 1 : vector<8x128xf32>, i32 -> vector<8x128xf32>
    %c32_i32_198 = arith.constant 32 : i32
    %295 = tpu.dynamic_rotate %291 by %c32_i32_198 dim 1 : vector<8x128xf32>, i32 -> vector<8x128xf32>
    %c0_199 = arith.constant 0 : index
    %c0_200 = arith.constant 0 : index
    %296 = vector.load %arg15[%c0_199, %c0_200] : memref<8x128xf32, #tpu.memory_space<vmem>>, vector<8x128xf32>
    %297 = arith.mulf %293, %296 : vector<8x128xf32>
    %298 = arith.mulf %291, %294 : vector<8x128xf32>
    %299 = arith.addf %297, %298 : vector<8x128xf32>
    %300 = math.tanh %299 : vector<8x128xf32>
    %301 = arith.mulf %295, %300 : vector<8x128xf32>
    %c0_201 = arith.constant 0 : index
    %c0_202 = arith.constant 0 : index
    %302 = vector.load %arg15[%c0_201, %c0_202] : memref<8x128xf32, #tpu.memory_space<vmem>>, vector<8x128xf32>
    tpu.vector_store %arg15[%c0_201, %c0_202], %299 {strides = array<i32>} : memref<8x128xf32, #tpu.memory_space<vmem>>, vector<8x128xf32>,
    %c0_203 = arith.constant 0 : index
    %c0_204 = arith.constant 0 : index
    %303 = vector.load %arg14[%c0_203, %c0_204] : memref<8x128xf32, #tpu.memory_space<vmem>>, vector<8x128xf32>
    tpu.vector_store %arg14[%c0_203, %c0_204], %301 {strides = array<i32>} : memref<8x128xf32, #tpu.memory_space<vmem>>, vector<8x128xf32>,
    %c3_i32_205 = arith.constant 3 : i32
    %c8_i32_206 = arith.constant 8 : i32
    %304 = arith.muli %c3_i32_205, %c8_i32_206 : i32
    %305 = tpu.assume_multiple %304, 8 : i32
    %306 = arith.index_cast %305 : i32 to index
    %c0_207 = arith.constant 0 : index
    %307 = vector.load %arg12[%306, %c0_207] : memref<64x128xf32, #tpu.memory_space<vmem>>, vector<8x128xf32>
    %c0_208 = arith.constant 0 : index
    %c0_209 = arith.constant 0 : index
    %308 = vector.load %arg14[%c0_208, %c0_209] : memref<8x128xf32, #tpu.memory_space<vmem>>, vector<8x128xf32>
    %cst_210 = arith.constant dense<0.000000e+00> : vector<8x128xf32>
    %309 = tpu.matmul %308, %227, %cst_210 {dimension_numbers = #tpu.dot_dimension_numbers<[1], [0], [0], [1], [0, 0, 1, 1], [], []>} : vector<8x128xf32>, vector<128x128xf32>, vector<8x128xf32> -> vector<8x128xf32>
    %310 = arith.addf %307, %309 : vector<8x128xf32>
    %311 = arith.negf %310 : vector<8x128xf32>
    %312 = math.exp %311 : vector<8x128xf32>
    %cst_211 = arith.constant 1.000000e+00 : f32
    %313 = vector.broadcast %cst_211 : f32 to vector<8x128xf32>
    %314 = arith.addf %313, %312 : vector<8x128xf32>
    %315 = arith.divf %313, %314 : vector<8x128xf32>
    %316 = math.tanh %310 : vector<8x128xf32>
    %c96_i32_212 = arith.constant 96 : i32
    %317 = tpu.dynamic_rotate %315 by %c96_i32_212 dim 1 : vector<8x128xf32>, i32 -> vector<8x128xf32>
    %c64_i32_213 = arith.constant 64 : i32
    %318 = tpu.dynamic_rotate %316 by %c64_i32_213 dim 1 : vector<8x128xf32>, i32 -> vector<8x128xf32>
    %c32_i32_214 = arith.constant 32 : i32
    %319 = tpu.dynamic_rotate %315 by %c32_i32_214 dim 1 : vector<8x128xf32>, i32 -> vector<8x128xf32>
    %c0_215 = arith.constant 0 : index
    %c0_216 = arith.constant 0 : index
    %320 = vector.load %arg15[%c0_215, %c0_216] : memref<8x128xf32, #tpu.memory_space<vmem>>, vector<8x128xf32>
    %321 = arith.mulf %317, %320 : vector<8x128xf32>
    %322 = arith.mulf %315, %318 : vector<8x128xf32>
    %323 = arith.addf %321, %322 : vector<8x128xf32>
    %324 = math.tanh %323 : vector<8x128xf32>
    %325 = arith.mulf %319, %324 : vector<8x128xf32>
    %c0_217 = arith.constant 0 : index
    %c0_218 = arith.constant 0 : index
    %326 = vector.load %arg15[%c0_217, %c0_218] : memref<8x128xf32, #tpu.memory_space<vmem>>, vector<8x128xf32>
    tpu.vector_store %arg15[%c0_217, %c0_218], %323 {strides = array<i32>} : memref<8x128xf32, #tpu.memory_space<vmem>>, vector<8x128xf32>,
    %c0_219 = arith.constant 0 : index
    %c0_220 = arith.constant 0 : index
    %327 = vector.load %arg14[%c0_219, %c0_220] : memref<8x128xf32, #tpu.memory_space<vmem>>, vector<8x128xf32>
    tpu.vector_store %arg14[%c0_219, %c0_220], %325 {strides = array<i32>} : memref<8x128xf32, #tpu.memory_space<vmem>>, vector<8x128xf32>,
    %c4_i32_221 = arith.constant 4 : i32
    %c8_i32_222 = arith.constant 8 : i32
    %328 = arith.muli %c4_i32_221, %c8_i32_222 : i32
    %329 = tpu.assume_multiple %328, 8 : i32
    %330 = arith.index_cast %329 : i32 to index
    %c0_223 = arith.constant 0 : index
    %331 = vector.load %arg12[%330, %c0_223] : memref<64x128xf32, #tpu.memory_space<vmem>>, vector<8x128xf32>
    %c0_224 = arith.constant 0 : index
    %c0_225 = arith.constant 0 : index
    %332 = vector.load %arg14[%c0_224, %c0_225] : memref<8x128xf32, #tpu.memory_space<vmem>>, vector<8x128xf32>
    %cst_226 = arith.constant dense<0.000000e+00> : vector<8x128xf32>
    %333 = tpu.matmul %332, %227, %cst_226 {dimension_numbers = #tpu.dot_dimension_numbers<[1], [0], [0], [1], [0, 0, 1, 1], [], []>} : vector<8x128xf32>, vector<128x128xf32>, vector<8x128xf32> -> vector<8x128xf32>
    %334 = arith.addf %331, %333 : vector<8x128xf32>
    %335 = arith.negf %334 : vector<8x128xf32>
    %336 = math.exp %335 : vector<8x128xf32>
    %cst_227 = arith.constant 1.000000e+00 : f32
    %337 = vector.broadcast %cst_227 : f32 to vector<8x128xf32>
    %338 = arith.addf %337, %336 : vector<8x128xf32>
    %339 = arith.divf %337, %338 : vector<8x128xf32>
    %340 = math.tanh %334 : vector<8x128xf32>
    %c96_i32_228 = arith.constant 96 : i32
    %341 = tpu.dynamic_rotate %339 by %c96_i32_228 dim 1 : vector<8x128xf32>, i32 -> vector<8x128xf32>
    %c64_i32_229 = arith.constant 64 : i32
    %342 = tpu.dynamic_rotate %340 by %c64_i32_229 dim 1 : vector<8x128xf32>, i32 -> vector<8x128xf32>
    %c32_i32_230 = arith.constant 32 : i32
    %343 = tpu.dynamic_rotate %339 by %c32_i32_230 dim 1 : vector<8x128xf32>, i32 -> vector<8x128xf32>
    %c0_231 = arith.constant 0 : index
    %c0_232 = arith.constant 0 : index
    %344 = vector.load %arg15[%c0_231, %c0_232] : memref<8x128xf32, #tpu.memory_space<vmem>>, vector<8x128xf32>
    %345 = arith.mulf %341, %344 : vector<8x128xf32>
    %346 = arith.mulf %339, %342 : vector<8x128xf32>
    %347 = arith.addf %345, %346 : vector<8x128xf32>
    %348 = math.tanh %347 : vector<8x128xf32>
    %349 = arith.mulf %343, %348 : vector<8x128xf32>
    %c0_233 = arith.constant 0 : index
    %c0_234 = arith.constant 0 : index
    %350 = vector.load %arg15[%c0_233, %c0_234] : memref<8x128xf32, #tpu.memory_space<vmem>>, vector<8x128xf32>
    tpu.vector_store %arg15[%c0_233, %c0_234], %347 {strides = array<i32>} : memref<8x128xf32, #tpu.memory_space<vmem>>, vector<8x128xf32>,
    %c0_235 = arith.constant 0 : index
    %c0_236 = arith.constant 0 : index
    %351 = vector.load %arg14[%c0_235, %c0_236] : memref<8x128xf32, #tpu.memory_space<vmem>>, vector<8x128xf32>
    tpu.vector_store %arg14[%c0_235, %c0_236], %349 {strides = array<i32>} : memref<8x128xf32, #tpu.memory_space<vmem>>, vector<8x128xf32>,
    %c5_i32_237 = arith.constant 5 : i32
    %c8_i32_238 = arith.constant 8 : i32
    %352 = arith.muli %c5_i32_237, %c8_i32_238 : i32
    %353 = tpu.assume_multiple %352, 8 : i32
    %354 = arith.index_cast %353 : i32 to index
    %c0_239 = arith.constant 0 : index
    %355 = vector.load %arg12[%354, %c0_239] : memref<64x128xf32, #tpu.memory_space<vmem>>, vector<8x128xf32>
    %c0_240 = arith.constant 0 : index
    %c0_241 = arith.constant 0 : index
    %356 = vector.load %arg14[%c0_240, %c0_241] : memref<8x128xf32, #tpu.memory_space<vmem>>, vector<8x128xf32>
    %cst_242 = arith.constant dense<0.000000e+00> : vector<8x128xf32>
    %357 = tpu.matmul %356, %227, %cst_242 {dimension_numbers = #tpu.dot_dimension_numbers<[1], [0], [0], [1], [0, 0, 1, 1], [], []>} : vector<8x128xf32>, vector<128x128xf32>, vector<8x128xf32> -> vector<8x128xf32>
    %358 = arith.addf %355, %357 : vector<8x128xf32>
    %359 = arith.negf %358 : vector<8x128xf32>
    %360 = math.exp %359 : vector<8x128xf32>
    %cst_243 = arith.constant 1.000000e+00 : f32
    %361 = vector.broadcast %cst_243 : f32 to vector<8x128xf32>
    %362 = arith.addf %361, %360 : vector<8x128xf32>
    %363 = arith.divf %361, %362 : vector<8x128xf32>
    %364 = math.tanh %358 : vector<8x128xf32>
    %c96_i32_244 = arith.constant 96 : i32
    %365 = tpu.dynamic_rotate %363 by %c96_i32_244 dim 1 : vector<8x128xf32>, i32 -> vector<8x128xf32>
    %c64_i32_245 = arith.constant 64 : i32
    %366 = tpu.dynamic_rotate %364 by %c64_i32_245 dim 1 : vector<8x128xf32>, i32 -> vector<8x128xf32>
    %c32_i32_246 = arith.constant 32 : i32
    %367 = tpu.dynamic_rotate %363 by %c32_i32_246 dim 1 : vector<8x128xf32>, i32 -> vector<8x128xf32>
    %c0_247 = arith.constant 0 : index
    %c0_248 = arith.constant 0 : index
    %368 = vector.load %arg15[%c0_247, %c0_248] : memref<8x128xf32, #tpu.memory_space<vmem>>, vector<8x128xf32>
    %369 = arith.mulf %365, %368 : vector<8x128xf32>
    %370 = arith.mulf %363, %366 : vector<8x128xf32>
    %371 = arith.addf %369, %370 : vector<8x128xf32>
    %372 = math.tanh %371 : vector<8x128xf32>
    %373 = arith.mulf %367, %372 : vector<8x128xf32>
    %c0_249 = arith.constant 0 : index
    %c0_250 = arith.constant 0 : index
    %374 = vector.load %arg15[%c0_249, %c0_250] : memref<8x128xf32, #tpu.memory_space<vmem>>, vector<8x128xf32>
    tpu.vector_store %arg15[%c0_249, %c0_250], %371 {strides = array<i32>} : memref<8x128xf32, #tpu.memory_space<vmem>>, vector<8x128xf32>,
    %c0_251 = arith.constant 0 : index
    %c0_252 = arith.constant 0 : index
    %375 = vector.load %arg14[%c0_251, %c0_252] : memref<8x128xf32, #tpu.memory_space<vmem>>, vector<8x128xf32>
    tpu.vector_store %arg14[%c0_251, %c0_252], %373 {strides = array<i32>} : memref<8x128xf32, #tpu.memory_space<vmem>>, vector<8x128xf32>,
    %c6_i32_253 = arith.constant 6 : i32
    %c8_i32_254 = arith.constant 8 : i32
    %376 = arith.muli %c6_i32_253, %c8_i32_254 : i32
    %377 = tpu.assume_multiple %376, 8 : i32
    %378 = arith.index_cast %377 : i32 to index
    %c0_255 = arith.constant 0 : index
    %379 = vector.load %arg12[%378, %c0_255] : memref<64x128xf32, #tpu.memory_space<vmem>>, vector<8x128xf32>
    %c0_256 = arith.constant 0 : index
    %c0_257 = arith.constant 0 : index
    %380 = vector.load %arg14[%c0_256, %c0_257] : memref<8x128xf32, #tpu.memory_space<vmem>>, vector<8x128xf32>
    %cst_258 = arith.constant dense<0.000000e+00> : vector<8x128xf32>
    %381 = tpu.matmul %380, %227, %cst_258 {dimension_numbers = #tpu.dot_dimension_numbers<[1], [0], [0], [1], [0, 0, 1, 1], [], []>} : vector<8x128xf32>, vector<128x128xf32>, vector<8x128xf32> -> vector<8x128xf32>
    %382 = arith.addf %379, %381 : vector<8x128xf32>
    %383 = arith.negf %382 : vector<8x128xf32>
    %384 = math.exp %383 : vector<8x128xf32>
    %cst_259 = arith.constant 1.000000e+00 : f32
    %385 = vector.broadcast %cst_259 : f32 to vector<8x128xf32>
    %386 = arith.addf %385, %384 : vector<8x128xf32>
    %387 = arith.divf %385, %386 : vector<8x128xf32>
    %388 = math.tanh %382 : vector<8x128xf32>
    %c96_i32_260 = arith.constant 96 : i32
    %389 = tpu.dynamic_rotate %387 by %c96_i32_260 dim 1 : vector<8x128xf32>, i32 -> vector<8x128xf32>
    %c64_i32_261 = arith.constant 64 : i32
    %390 = tpu.dynamic_rotate %388 by %c64_i32_261 dim 1 : vector<8x128xf32>, i32 -> vector<8x128xf32>
    %c32_i32_262 = arith.constant 32 : i32
    %391 = tpu.dynamic_rotate %387 by %c32_i32_262 dim 1 : vector<8x128xf32>, i32 -> vector<8x128xf32>
    %c0_263 = arith.constant 0 : index
    %c0_264 = arith.constant 0 : index
    %392 = vector.load %arg15[%c0_263, %c0_264] : memref<8x128xf32, #tpu.memory_space<vmem>>, vector<8x128xf32>
    %393 = arith.mulf %389, %392 : vector<8x128xf32>
    %394 = arith.mulf %387, %390 : vector<8x128xf32>
    %395 = arith.addf %393, %394 : vector<8x128xf32>
    %396 = math.tanh %395 : vector<8x128xf32>
    %397 = arith.mulf %391, %396 : vector<8x128xf32>
    %c0_265 = arith.constant 0 : index
    %c0_266 = arith.constant 0 : index
    %398 = vector.load %arg15[%c0_265, %c0_266] : memref<8x128xf32, #tpu.memory_space<vmem>>, vector<8x128xf32>
    tpu.vector_store %arg15[%c0_265, %c0_266], %395 {strides = array<i32>} : memref<8x128xf32, #tpu.memory_space<vmem>>, vector<8x128xf32>,
    %c0_267 = arith.constant 0 : index
    %c0_268 = arith.constant 0 : index
    %399 = vector.load %arg14[%c0_267, %c0_268] : memref<8x128xf32, #tpu.memory_space<vmem>>, vector<8x128xf32>
    tpu.vector_store %arg14[%c0_267, %c0_268], %397 {strides = array<i32>} : memref<8x128xf32, #tpu.memory_space<vmem>>, vector<8x128xf32>,
    %c7_i32_269 = arith.constant 7 : i32
    %c8_i32_270 = arith.constant 8 : i32
    %400 = arith.muli %c7_i32_269, %c8_i32_270 : i32
    %401 = tpu.assume_multiple %400, 8 : i32
    %402 = arith.index_cast %401 : i32 to index
    %c0_271 = arith.constant 0 : index
    %403 = vector.load %arg12[%402, %c0_271] : memref<64x128xf32, #tpu.memory_space<vmem>>, vector<8x128xf32>
    %c0_272 = arith.constant 0 : index
    %c0_273 = arith.constant 0 : index
    %404 = vector.load %arg14[%c0_272, %c0_273] : memref<8x128xf32, #tpu.memory_space<vmem>>, vector<8x128xf32>
    %cst_274 = arith.constant dense<0.000000e+00> : vector<8x128xf32>
    %405 = tpu.matmul %404, %227, %cst_274 {dimension_numbers = #tpu.dot_dimension_numbers<[1], [0], [0], [1], [0, 0, 1, 1], [], []>} : vector<8x128xf32>, vector<128x128xf32>, vector<8x128xf32> -> vector<8x128xf32>
    %406 = arith.addf %403, %405 : vector<8x128xf32>
    %407 = arith.negf %406 : vector<8x128xf32>
    %408 = math.exp %407 : vector<8x128xf32>
    %cst_275 = arith.constant 1.000000e+00 : f32
    %409 = vector.broadcast %cst_275 : f32 to vector<8x128xf32>
    %410 = arith.addf %409, %408 : vector<8x128xf32>
    %411 = arith.divf %409, %410 : vector<8x128xf32>
    %412 = math.tanh %406 : vector<8x128xf32>
    %c96_i32_276 = arith.constant 96 : i32
    %413 = tpu.dynamic_rotate %411 by %c96_i32_276 dim 1 : vector<8x128xf32>, i32 -> vector<8x128xf32>
    %c64_i32_277 = arith.constant 64 : i32
    %414 = tpu.dynamic_rotate %412 by %c64_i32_277 dim 1 : vector<8x128xf32>, i32 -> vector<8x128xf32>
    %c32_i32_278 = arith.constant 32 : i32
    %415 = tpu.dynamic_rotate %411 by %c32_i32_278 dim 1 : vector<8x128xf32>, i32 -> vector<8x128xf32>
    %c0_279 = arith.constant 0 : index
    %c0_280 = arith.constant 0 : index
    %416 = vector.load %arg15[%c0_279, %c0_280] : memref<8x128xf32, #tpu.memory_space<vmem>>, vector<8x128xf32>
    %417 = arith.mulf %413, %416 : vector<8x128xf32>
    %418 = arith.mulf %411, %414 : vector<8x128xf32>
    %419 = arith.addf %417, %418 : vector<8x128xf32>
    %420 = math.tanh %419 : vector<8x128xf32>
    %421 = arith.mulf %415, %420 : vector<8x128xf32>
    %c0_281 = arith.constant 0 : index
    %c0_282 = arith.constant 0 : index
    %422 = vector.load %arg15[%c0_281, %c0_282] : memref<8x128xf32, #tpu.memory_space<vmem>>, vector<8x128xf32>
    tpu.vector_store %arg15[%c0_281, %c0_282], %419 {strides = array<i32>} : memref<8x128xf32, #tpu.memory_space<vmem>>, vector<8x128xf32>,
    %c0_283 = arith.constant 0 : index
    %c0_284 = arith.constant 0 : index
    %423 = vector.load %arg14[%c0_283, %c0_284] : memref<8x128xf32, #tpu.memory_space<vmem>>, vector<8x128xf32>
    tpu.vector_store %arg14[%c0_283, %c0_284], %421 {strides = array<i32>} : memref<8x128xf32, #tpu.memory_space<vmem>>, vector<8x128xf32>,
    %c8_i32_285 = arith.constant 8 : i32
    %c0_286 = arith.constant 0 : index
    %c0_287 = arith.constant 0 : index
    %424 = vector.load %arg14[%c0_286, %c0_287] : memref<8x128xf32, #tpu.memory_space<vmem>>, vector<8x128xf32>
    %425 = vector.extract_strided_slice %424 {offsets = [0, 0], sizes = [4, 32], strides = [1, 1]} : vector<8x128xf32> to vector<4x32xf32>
    %cst_288 = arith.constant dense<0.000000e+00> : vector<32xf32>
    %426 = vector.multi_reduction <add>, %425, %cst_288 [0] : vector<4x32xf32> to vector<32xf32>
    %427 = vector.shape_cast %426 : vector<32xf32> to vector<1x32xf32>
    %cst_289 = arith.constant 4.000000e+00 : f32
    %428 = vector.broadcast %cst_289 : f32 to vector<1x32xf32>
    %429 = arith.divf %427, %428 : vector<1x32xf32>
    %430 = vector.broadcast %429 : vector<1x32xf32> to vector<4x32xf32>
    %431 = arith.subf %425, %430 : vector<4x32xf32>
    %432 = arith.mulf %431, %431 : vector<4x32xf32>
    %cst_290 = arith.constant dense<0.000000e+00> : vector<32xf32>
    %433 = vector.multi_reduction <add>, %432, %cst_290 [0] : vector<4x32xf32> to vector<32xf32>
    %434 = vector.shape_cast %433 : vector<32xf32> to vector<1x32xf32>
    %cst_291 = arith.constant 4.000000e+00 : f32
    %435 = vector.broadcast %cst_291 : f32 to vector<1x32xf32>
    %436 = arith.divf %434, %435 : vector<1x32xf32>
    %437 = vector.broadcast %429 : vector<1x32xf32> to vector<4x32xf32>
    %438 = arith.subf %425, %437 : vector<4x32xf32>
    %cst_292 = arith.constant 9.99999974E-6 : f32
    %439 = vector.broadcast %cst_292 : f32 to vector<1x32xf32>
    %440 = arith.addf %436, %439 : vector<1x32xf32>
    %441 = math.rsqrt %440 : vector<1x32xf32>
    %442 = vector.broadcast %441 : vector<1x32xf32> to vector<4x32xf32>
    %443 = arith.mulf %438, %442 : vector<4x32xf32>
    %c0_293 = arith.constant 0 : index
    %c0_294 = arith.constant 0 : index
    %444 = vector.load %arg7[%c0_293, %c0_294] : memref<1x32xf32, #tpu.memory_space<vmem>>, vector<1x32xf32>
    %445 = vector.broadcast %444 : vector<1x32xf32> to vector<4x32xf32>
    %446 = arith.mulf %443, %445 : vector<4x32xf32>
    %c0_295 = arith.constant 0 : index
    %c0_296 = arith.constant 0 : index
    %447 = vector.load %arg8[%c0_295, %c0_296] : memref<1x32xf32, #tpu.memory_space<vmem>>, vector<1x32xf32>
    %448 = vector.broadcast %447 : vector<1x32xf32> to vector<4x32xf32>
    %449 = arith.addf %446, %448 : vector<4x32xf32>
    %c0_297 = arith.constant 0 : index
    %c0_298 = arith.constant 0 : index
    %450 = vector.load %arg9[%c0_297, %c0_298] : memref<32x3xf32, #tpu.memory_space<vmem>>, vector<32x3xf32>
    %cst_299 = arith.constant dense<0.000000e+00> : vector<4x3xf32>
    %451 = tpu.matmul %449, %450, %cst_299 {dimension_numbers = #tpu.dot_dimension_numbers<[1], [0], [0], [1], [0, 0, 1, 1], [], []>} : vector<4x32xf32>, vector<32x3xf32>, vector<4x3xf32> -> vector<4x3xf32>
    %c0_300 = arith.constant 0 : index
    %c0_301 = arith.constant 0 : index
    %452 = vector.load %arg10[%c0_300, %c0_301] : memref<1x3xf32, #tpu.memory_space<vmem>>, vector<1x3xf32>
    %453 = vector.broadcast %452 : vector<1x3xf32> to vector<4x3xf32>
    %454 = arith.addf %451, %453 : vector<4x3xf32>
    %c0_302 = arith.constant 0 : index
    %c0_303 = arith.constant 0 : index
    %455 = vector.load %arg11[%c0_302, %c0_303] : memref<4x3xf32, #tpu.memory_space<vmem>>, vector<4x3xf32>
    tpu.vector_store %arg11[%c0_302, %c0_303], %454 {strides = array<i32>} : memref<4x3xf32, #tpu.memory_space<vmem>>, vector<4x3xf32>,
    return
  }
}

</mosaic_0001>

<bundles_post_ra>
// kernel: squeeze.1
= control target key start
LH: loop header
LB: loop body
LE: loop exit
PB: predicated region body
PF: predicated region fallthrough
CT: control target
= control target key end

     0   :  { %s66_s8 = smov 116   ;;  %vm7_vm0 = vcmask 31744   ;;  %s67_s11 = smov 120   ;;  %s117_s0 = inlined_call_operand.vmem [shape: f32[4,32], index: 0, kind: input, shape index: {}]   ;;  %s118_s1 = inlined_call_operand.vmem [shape: f32[4,8,4], index: 1, kind: output, shape index: {}]  }
   0x1   :  { %v4_v0 = vld [vmem:[%s117_s0] sm:$0xf]  ;;  %s65_s0 = smov 124   ;;  %s68_s12 = smov 112  }
   0x2   :  { %5 = vst [vmem:[#allocation0] sm:$0xf] %v4_v0  ;;  %s69_s13 = smov 108   ;;  %s70_s14 = smov 104  }
   0x3   :  { %s71_s15 = smov 100  }
   0x9   :  { %v9_v1 = vld [vmem:[#allocation0] sm:$0xf]  }
   0xa   :  { %v21_v2 = vld [vmem:[#allocation0] sm:$0xf]   ;;  %10 = vrot.lane.b32.xlu0 %v9_v1, %s65_s0 }
   0xb   :  { %22 = vrot.lane.b32.xlu1 %v21_v2, %s66_s8  ;;  %v15_v3 = vld [vmem:[#allocation0] sm:$0xf]  }
   0xc   :  { %v27_v4 = vld [vmem:[#allocation0] sm:$0xf]  }
   0xd   :  { %v6_v5 = vld [vmem:[#allocation0] sm:$0xf]  }
   0xe   :  { %8 = vst.msk [vmem:[%s118_s1] ss:$8 sm:$0xf] %vm7_vm0, %v6_v5   ;;  %16 = vrot.lane.b32.xlu0 %v15_v3, %s67_s11  ;;  %v33_v6 = vld [vmem:[#allocation0] sm:$0xf]  }
   0xf   :  { %28 = vrot.lane.b32.xlu1 %v27_v4, %s68_s12  ;;  %v39_v7 = vld [vmem:[#allocation0] sm:$0xf]  }
  0x10   :  { %v45_v8 = vld [vmem:[#allocation0] sm:$0xf]  }
  0x12   :  { %34 = vrot.lane.b32.xlu0 %v33_v6, %s69_s13 }
  0x13   :  { %40 = vrot.lane.b32.xlu1 %v39_v7, %s70_s14 }
  0x16   :  { %46 = vrot.lane.b32.xlu0 %v45_v8, %s71_s15 }
  0x7c   :  { %v11_v9 = vpop.permute.xlu0 %10  }
  0x7d   :  { %v23_v10 = vpop.permute.xlu1 %22   ;;  %51 = vst.msk [vmem:[%s118_s1 + $0x1] ss:$8 sm:$0xf] %vm7_vm0, %v11_v9  }
  0x7e   :  { %53 = vst.msk [vmem:[%s118_s1 + $0x3] ss:$8 sm:$0xf] %vm7_vm0, %v23_v10  }
  0x80   :  { %v17_v11 = vpop.permute.xlu0 %16  }
  0x81   :  { %v29_v12 = vpop.permute.xlu1 %28   ;;  %52 = vst.msk [vmem:[%s118_s1 + $0x2] ss:$8 sm:$0xf] %vm7_vm0, %v17_v11  }
  0x82   :  { %54 = vst.msk [vmem:[%s118_s1 + $0x4] ss:$8 sm:$0xf] %vm7_vm0, %v29_v12  }
  0x84   :  { %v35_v13 = vpop.permute.xlu0 %34  }
  0x85   :  { %v41_v14 = vpop.permute.xlu1 %40   ;;  %55 = vst.msk [vmem:[%s118_s1 + $0x5] ss:$8 sm:$0xf] %vm7_vm0, %v35_v13  }
  0x86   :  { %56 = vst.msk [vmem:[%s118_s1 + $0x6] ss:$8 sm:$0xf] %vm7_vm0, %v41_v14  }
  0x88   :  { %v47_v15 = vpop.permute.xlu0 %46  }
  0x89   :  { %57 = vst.msk [vmem:[%s118_s1 + $0x7] ss:$8 sm:$0xf] %vm7_vm0, %v47_v15  }

// kernel: lstm_model_forward.1
= control target key start
LH: loop header
LB: loop body
LE: loop exit
PB: predicated region body
PF: predicated region fallthrough
CT: control target
= control target key end

     0   :  { %16 = vsyncpa [#allocation7], 0  ;;  %s4454_s0 = inlined_call_operand.vmem [shape: f32[64,4], index: 0, kind: input, shape index: {}]   ;;  %s4455_s1 = inlined_call_operand.vmem [shape: f32[4,128], index: 1, kind: input, shape index: {}]   ;;  %s4456_s2 = inlined_call_operand.vmem [shape: f32[128,128], index: 2, kind: input, shape index: {}]   ;;  %s4457_s3 = inlined_call_operand.vmem [shape: f32[1,128], index: 3, kind: input, shape index: {}]   ;;  %s4458_s4 = inlined_call_operand.vmem [shape: f32[128,128], index: 4, kind: input, shape index: {}]   ;;  %s4459_s5 = inlined_call_operand.hbm [shape: f32[128,128], index: 5, kind: input, shape index: {}]   ;;  %s4460_s6 = inlined_call_operand.vmem [shape: f32[1,128], index: 6, kind: input, shape index: {}]   ;;  %s4461_s7 = inlined_call_operand.hbm [shape: f32[1,32], index: 7, kind: input, shape index: {}]   ;;  %s4462_s8 = inlined_call_operand.hbm [shape: f32[1,32], index: 8, kind: input, shape index: {}]   ;;  %s4463_s9 = inlined_call_operand.vmem [shape: f32[32,3], index: 9, kind: input, shape index: {}]   ;;  %s4464_s10 = inlined_call_operand.vmem [shape: f32[1,3], index: 10, kind: input, shape index: {}]   ;;  %s4465_s11 = inlined_call_operand.hbm [shape: f32[4,3], index: 11, kind: output, shape index: {}]  }
   0x1   :  { %17 = vsyncpa [#allocation10], 0 }
   0x2   :  { %18 = vsyncpa [#allocation8], 0  ;;  %s3711_s17 = smov [#allocation9]   ;;  %s3712_s19 = smov [#allocation6]  }
   0x3   :  { %s49_s18 = sshll.u32 %s3711_s17, 4  ;;  %s34_s20 = sshll.u32 %s3712_s19, 4  ;;  %s50_s18 = int_to_ptr.vmem [resolvable:$true] %s49_s18  ;;  %s3783_s20 = int_to_ptr.vmem [resolvable:$true] %s34_s20 }
   0x4   :  { %s3617_s23 = scalar_lea.hbm %s4461_s7, 16 }
   0x5   :  { %p3618_p0 = scmp.ne.s32.totalorder %s4461_s7, %s3617_s23  ;;  %p3621_p1 = scmp.lt.u32.totalorder %s3617_s23, %s4461_s7 }
   0x7   :  { %p3623_p2 = pnand %p3621_p1, %p3618_p0 }
   0x9   :  { %3626 = shalt.err (!%p3623_p2)
}
   0xa   :  { %s3627_s28 = scalar_lea.vmem %s50_s18, 16  ;;  %s3631_s29 = scalar_lea.vmem %s50_s18, 32 }
   0xb   :  { %p3628_p3 = scmp.ne.s32.totalorder %s50_s18, %s3627_s28  ;;  %p3632_p4 = scmp.lt.s32.totalorder %s50_s18, %s50_s18 }
   0xc   :  { %p3633_p5 = scmp.lt.s32.totalorder %s3631_s29, %s3627_s28 }
   0xe   :  { %p3634_p6 = por %p3633_p5, %p3632_p4 }
  0x10   :  { %p3635_p7 = pnand %p3634_p6, %p3628_p3 }
  0x12   :  { %3638 = shalt.err (!%p3635_p7)
}
  0x13   :  { %52 = dma.hbm_to_vmem [thread:$0]  %s4461_s7, 16, %s50_s18, [#allocation10]  }
  0x14   :  { %s3639_s15 = scalar_lea.hbm %s4459_s5, 2048 }
  0x15   :  { %p3640_p8 = scmp.ne.s32.totalorder %s4459_s5, %s3639_s15  ;;  %p3643_p9 = scmp.lt.u32.totalorder %s3639_s15, %s4459_s5 }
  0x17   :  { %p3645_p10 = pnand %p3643_p9, %p3640_p8 }
  0x19   :  { %3648 = shalt.err (!%p3645_p10)
}
  0x1a   :  { %s3649_s22 = scalar_lea.vmem %s3783_s20, 2048  ;;  %p3654_p12 = scmp.lt.s32.totalorder %s3783_s20, %s3783_s20 }
  0x1b   :  { %p3650_p11 = scmp.ne.s32.totalorder %s3783_s20, %s3649_s22  ;;  %p3655_p13 = scmp.lt.s32.totalorder %s3649_s22, %s3649_s22 }
  0x1d   :  { %p3656_p0 = por %p3655_p13, %p3654_p12 }
  0x1f   :  { %p3657_p1 = pnand %p3656_p0, %p3650_p11 }
  0x21   :  { %3660 = shalt.err (!%p3657_p1)
}
  0x22   :  { %s3713_s7 = smov 128   ;;  %s3714_s18 = smov 8  }
  0x23   :  { %40 = dma.hbm_to_vmem [thread:$0]  %s4459_s5, 2048, %s3783_s20, [#allocation7], %s3713_s7, %s3713_s7, %s3714_s18  }
  0x24   :  { %s3715_s25 = smov [#allocation11]   ;;  %s3661_s29 = scalar_lea.hbm %s4462_s8, 16 }
  0x25   :  { %s59_s26 = sshll.u32 %s3715_s25, 4  ;;  %p3662_p2 = scmp.ne.s32.totalorder %s4462_s8, %s3661_s29  ;;  %s60_s26 = int_to_ptr.vmem [resolvable:$true] %s59_s26 }
  0x26   :  { %p3665_p3 = scmp.lt.u32.totalorder %s3661_s29, %s4462_s8 }
  0x28   :  { %p3667_p4 = pnand %p3665_p3, %p3662_p2 }
  0x2a   :  { %3670 = shalt.err (!%p3667_p4)
}
  0x2b   :  { %s3671_s15 = scalar_lea.vmem %s60_s26, 16  ;;  %s3675_s5 = scalar_lea.vmem %s60_s26, 32 }
  0x2c   :  { %p3672_p5 = scmp.ne.s32.totalorder %s60_s26, %s3671_s15  ;;  %p3676_p6 = scmp.lt.s32.totalorder %s60_s26, %s60_s26 }
  0x2d   :  { %p3677_p7 = scmp.lt.s32.totalorder %s3675_s5, %s3671_s15 }
  0x2f   :  { %p3678_p8 = por %p3677_p7, %p3676_p6 }
  0x31   :  { %p3679_p9 = pnand %p3678_p8, %p3672_p5 }
  0x33   :  { %3682 = shalt.err (!%p3679_p9)
}
  0x34   :  { %62 = dma.hbm_to_vmem [thread:$0]  %s4462_s8, 16, %s60_s26, [#allocation10]  }
  0x35   :  { %3705 = dma.done.wait [#allocation7], 2048  }
  0x36   :  { %3706 = vsyncadd [#allocation7], 4294965248 }
  0x37   :  { %3707 = dma.done.wait [#allocation10], 32  }
  0x38   :  { %3708 = vsyncadd [#allocation10], 4294967264  ;;  %v3716_v0 = vmov 0.0|0.0   ;;  %vm3717_vm0 = vmmov 0   ;;  %v3718_v1 = vmov 0.0   ;;  %v234_v2 = vld [vmem:[%s4456_s2] sm:$0xff] }
  0x39   :  { %3053 = vmatprep.subr.bf16.mxu1 %v3716_v0  ;;  %2470 = vmatprep.mubr.msk.f32.mxu1 %vm3717_vm0, %v3718_v1  ;;  %v235_v3 = vld [vmem:[%s4456_s2 + $0x8] sm:$0xff]  ;;  %v236_v4 = vld [vmem:[%s4456_s2 + $0x10] sm:$0xff]  ;;  %v237_v6 = vld [vmem:[%s4456_s2 + $0x18] sm:$0xff]  ;;  %vm117_vm1 = vcmask 1043456   ;;  %vm92_vm2 = vcmask 31744   ;;  %s3719_s21 = smov 32  }
  0x3a   :  { %v3838_v5 = vpack.c.bf16 %v235_v3, %v234_v2  ;;  %v3844_v7 = vpack.c.bf16 %v237_v6, %v236_v4  ;;  %v238_v8 = vld [vmem:[%s4456_s2 + $0x20] sm:$0xff]  ;;  %v239_v9 = vld [vmem:[%s4456_s2 + $0x28] sm:$0xff]  ;;  %v240_v14 = vld [vmem:[%s4456_s2 + $0x30] sm:$0xff]  ;;  %s3720_s22 = smov 96   ;;  %s3721_s18 = smov 64   ;;  %vm1941_vm3 = vcmask 257024  }
  0x3b   :  { %v84_v10 = vld [vmem:[%s4455_s1] sm:$0xf]  ;;  %v77_v12 = vld [vmem:[%s4454_s0 + $0x8] sm:$0xff]  ;;  %v3864_v13 = vpack.c.bf16 %v239_v9, %v238_v8  ;;  %v241_v15 = vld [vmem:[%s4456_s2 + $0x38] sm:$0xff]  ;;  %vm1991_vm4 = vcmask 261120   ;;  %s3722_s15 = smov [#allocation12]  }
  0x3c   :  { %3055 = vmatpush3.bf16.msra.mxu1 %v3838_v5  ;;  %2424 = vmatprep.subr.msk.mxu0 %vm117_vm1, %v84_v10  ;;  %v76_v11 = vld [vmem:[%s4454_s0] sm:$0xff]  ;;  %v3878_v16 = vpack.c.bf16 %v241_v15, %v240_v14  ;;  %v243_v18 = vld [vmem:[%s4456_s2 + $0x48] sm:$0xff]  ;;  %v244_v20 = vld [vmem:[%s4456_s2 + $0x50] sm:$0xff]  ;;  %s2073_s5 = sshll.u32 %s3722_s15, 4  ;;  %vm2065_vm5 = vcmask 19456   ;;  %s2074_s5 = int_to_ptr.vmem [resolvable:$true] %s2073_s5 }
  0x3d   :  { %3056 = vmatprep.subr.bf16.mxu1 %v3716_v0  ;;  %2425 = vmatpush3.msk.msra.mxu0 %vm117_vm1, %v84_v10  ;;  %v242_v17 = vld [vmem:[%s4456_s2 + $0x40] sm:$0xff]  ;;  %v245_v21 = vld [vmem:[%s4456_s2 + $0x58] sm:$0xff]  ;;  %v247_v24 = vld [vmem:[%s4456_s2 + $0x68] sm:$0xff]  ;;  %s3683_s20 = scalar_lea.vmem %s2074_s5, 64  ;;  %p3688_p11 = scmp.lt.s32.totalorder %s2074_s5, %s2074_s5 }
  0x3e   :  { %2426 = vmatprep.mubr.msk.f32.mxu0 %vm92_vm2, %v76_v11  ;;  %3077 = vmatprep.subr.bf16.mxu0 %v3716_v0  ;;  %v3890_v19 = vpack.c.bf16 %v243_v18, %v242_v17  ;;  %v3902_v22 = vpack.c.bf16 %v245_v21, %v244_v20  ;;  %v246_v23 = vld [vmem:[%s4456_s2 + $0x60] sm:$0xff]  ;;  %v248_v26 = vld [vmem:[%s4456_s2 + $0x70] sm:$0xff]  ;;  %v249_v27 = vld [vmem:[%s4456_s2 + $0x78] sm:$0xff]  ;;  %p3684_p10 = scmp.ne.s32.totalorder %s2074_s5, %s3683_s20  ;;  %p3689_p12 = scmp.lt.s32.totalorder %s3683_s20, %s3683_s20 }
  0x3f   :  { %2427 = vmatmul.mubr.msk.f32.vlgmr.msra.gmra.mrb[0].mxu0 %vm92_vm2, %v77_v12  ;;  %v3914_v25 = vpack.c.bf16 %v247_v24, %v246_v23  ;;  %v3926_v28 = vpack.c.bf16 %v249_v27, %v248_v26  ;;  %v3961_v31 = vld [vmem:[%s4457_s3] ss:$0 sm:$0xff]  ;;  %v78_v39 = vld [vmem:[%s4454_s0 + $0x10] sm:$0xff]  ;;  %v79_v40 = vld [vmem:[%s4454_s0 + $0x18] sm:$0xff] }
  0x40   :  { %3058 = vmatpush3.bf16.msra.mxu1 %v3844_v7  ;;  %3079 = vmatpush3.bf16.msra.mxu0 %v3838_v5  ;;  %v80_v41 = vld [vmem:[%s4454_s0 + $0x20] sm:$0xff]  ;;  %v81_v42 = vld [vmem:[%s4454_s0 + $0x28] sm:$0xff]  ;;  %v82_v43 = vld [vmem:[%s4454_s0 + $0x30] sm:$0xff]  ;;  %p3690_p13 = por %p3689_p12, %p3688_p11 }
  0x41   :  { %3059 = vmatprep.subr.bf16.mxu1 %v3716_v0  ;;  %3080 = vmatprep.subr.bf16.mxu0 %v3716_v0  ;;  %v83_v45 = vld [vmem:[%s4454_s0 + $0x38] sm:$0xff] }
  0x42   :  { %2429 = vmatprep.mubr.msk.f32.mxu0 %vm92_vm2, %v78_v39  ;;  %p3691_p0 = pnand %p3690_p13, %p3684_p10 }
  0x43   :  { %2430 = vmatmul.mubr.msk.f32.gmra.mrb[2].mxu0 %vm92_vm2, %v79_v40 }
  0x44   :  { %3061 = vmatpush3.bf16.msra.mxu1 %v3864_v13  ;;  %3082 = vmatpush3.bf16.msra.mxu0 %v3844_v7 }
  0x45   :  { %3062 = vmatprep.subr.bf16.mxu1 %v3716_v0  ;;  %3083 = vmatprep.subr.bf16.mxu0 %v3716_v0 }
  0x46   :  { %2432 = vmatprep.mubr.msk.f32.mxu0 %vm92_vm2, %v80_v41 }
  0x47   :  { %2433 = vmatmul.mubr.msk.f32.gmra.mrb[4].mxu0 %vm92_vm2, %v81_v42 }
  0x48   :  { %3064 = vmatpush3.bf16.msra.mxu1 %v3878_v16  ;;  %3085 = vmatpush3.bf16.msra.mxu0 %v3864_v13 }
  0x49   :  { %3065 = vmatprep.subr.bf16.mxu1 %v3716_v0  ;;  %3086 = vmatprep.subr.bf16.mxu0 %v3716_v0 }
  0x4a   :  { %2435 = vmatprep.mubr.msk.f32.mxu0 %vm92_vm2, %v82_v43 }
  0x4b   :  { %2436 = vmatmul.mubr.msk.f32.gmra.mrb[6].mxu0 %vm92_vm2, %v83_v45 }
  0x4c   :  { %3067 = vmatpush3.bf16.msra.mxu1 %v3890_v19  ;;  %3088 = vmatpush3.bf16.msra.mxu0 %v3878_v16 }
  0x4d   :  { %3068 = vmatprep.subr.bf16.mxu1 %v3716_v0  ;;  %3089 = vmatprep.subr.bf16.mxu0 %v3716_v0 }
  0x4e   :  { %2505 = vmatprep.mubr.msk.f32.mxu0 %vm3717_vm0, %v3718_v1 }
  0x50   :  { %3070 = vmatpush3.bf16.msra.mxu1 %v3902_v22  ;;  %3091 = vmatpush3.bf16.msra.mxu0 %v3890_v19 }
  0x51   :  { %3071 = vmatprep.subr.bf16.mxu1 %v3716_v0  ;;  %3092 = vmatprep.subr.bf16.mxu0 %v3716_v0 }
  0x54   :  { %3073 = vmatpush3.bf16.msra.mxu1 %v3914_v25  ;;  %3094 = vmatpush3.bf16.msra.mxu0 %v3902_v22 }
  0x55   :  { %3074 = vmatprep.subr.bf16.mxu1 %v3716_v0  ;;  %3095 = vmatprep.subr.bf16.mxu0 %v3716_v0 }
  0x58   :  { %3076 = vmatpush3.bf16.msra.mxu1 %v3926_v28  ;;  %3097 = vmatpush3.bf16.msra.mxu0 %v3914_v25 }
  0x59   :  { %3101 = vmatprep.subr.bf16.mxu1 %v3716_v0  ;;  %3098 = vmatprep.subr.bf16.mxu0 %v3716_v0 }
  0x5b   :  { %2471 = vmatmul.mubr.f32.vlgmr.msra.gmra.mrb[0].mxu1 %v3718_v1 }
  0x5c   :  { %3103 = vmatpush3.bf16.msra.mxu1 %v3838_v5  ;;  %2540 = vmatprep.mubr.msk.f32.mxu1 %vm3717_vm0, %v3718_v1 }
  0x5d   :  { %3104 = vmatprep.subr.bf16.mxu1 %v3716_v0  ;;  %3100 = vmatpush3.bf16.msra.mxu0 %v3926_v28 }
  0x5e   :  { %3125 = vmatprep.subr.bf16.mxu0 %v3716_v0 }
  0x60   :  { %3106 = vmatpush3.bf16.msra.mxu1 %v3844_v7 }
  0x61   :  { %3107 = vmatprep.subr.bf16.mxu1 %v3716_v0 }
  0x64   :  { %3109 = vmatpush3.bf16.msra.mxu1 %v3864_v13 }
  0x65   :  { %3110 = vmatprep.subr.bf16.mxu1 %v3716_v0 }
  0x68   :  { %3112 = vmatpush3.bf16.msra.mxu1 %v3878_v16 }
  0x69   :  { %3113 = vmatprep.subr.bf16.mxu1 %v3716_v0 }
  0x6c   :  { %3115 = vmatpush3.bf16.msra.mxu1 %v3890_v19 }
  0x6d   :  { %3116 = vmatprep.subr.bf16.mxu1 %v3716_v0 }
  0x70   :  { %3118 = vmatpush3.bf16.msra.mxu1 %v3902_v22 }
  0x71   :  { %3119 = vmatprep.subr.bf16.mxu1 %v3716_v0 }
  0x74   :  { %3121 = vmatpush3.bf16.msra.mxu1 %v3914_v25 }
  0x75   :  { %3122 = vmatprep.subr.bf16.mxu1 %v3716_v0 }
  0x78   :  { %3124 = vmatpush3.bf16.msra.mxu1 %v3926_v28 }
  0x79   :  { %3149 = vmatprep.subr.bf16.mxu1 %v3716_v0 }
 0x112   :  { %v3956_v29 = vpop.f32.mrb[0].mxu0 }
 0x113   :  { %v187_v30 = vpop.f32.mrb[1].mxu0  ;;  %v193_v61 = vadd.f32 %v3956_v29, %v3961_v31 }
 0x114   :  { %v188_v32 = vadd.f32 %v3961_v31, %v187_v30 }
 0x116   :  { %v4014_v55 = vpop.f32.mrb[2].mxu0 }
 0x117   :  { %v197_v56 = vpop.f32.mrb[3].mxu0  ;;  %v203_v42 = vadd.f32 %v4014_v55, %v3961_v31 }
 0x118   :  { %v198_v21 = vadd.f32 %v3961_v31, %v197_v56 }
 0x11a   :  { %v4016_v57 = vpop.f32.mrb[4].mxu0 }
 0x11b   :  { %v4018_v58 = vpop.f32.mrb[5].mxu0 }
 0x11e   :  { %v4020_v59 = vpop.f32.mrb[6].mxu0 }
 0x11f   :  { %v4022_v60 = vpop.f32.mrb[7].mxu0 }
 0x12e   :  { %v320_v33 = vpop.f32.mrb[0].mxu1 }
 0x12f   :  { %v324_v34 = vadd.f32 %v320_v33, %v188_v32  ;;  %v2472_v35 = vpop.f32.mrb[1].mxu1 }
 0x131   :  { %v2093_v36 = vmul.f32 -1.442695, %v324_v34 }
 0x133   :  { %3487 = vpow2.f32 %v2093_v36 }
 0x13d   :  { %v3488_v37 = vpop.eup %3487 }
 0x13e   :  { %v328_v38 = vadd.f32 1.0, %v3488_v37 }
 0x140   :  { %3489 = vrcp.f32 %v328_v38 }
 0x141   :  { %3491 = vtanh.f32 %v324_v34 }
 0x14a   :  { %v3490_v44 = vpop.eup %3489 }
 0x14b   :  { %336 = vrot.lane.b32.xlu1 %v3490_v44, %s3719_s21  ;;  %332 = vrot.lane.b32.xlu0 %v3490_v44, %s3720_s22  ;;  %v3492_v46 = vpop.eup %3491 }
 0x14f   :  { %334 = vrot.lane.b32.xlu0 %v3492_v46, %s3721_s18 }
 0x1bd   :  { %v333_v47 = vpop.permute.xlu0 %332  ;;  %v337_v53 = vpop.permute.xlu1 %336 }
 0x1be   :  { %v339_v49 = vmul.f32 0.0, %v333_v47 }
 0x1c1   :  { %v335_v48 = vpop.permute.xlu0 %334 }
 0x1c2   :  { %v340_v50 = vmul.f32 %v3490_v44, %v335_v48 }
 0x1c4   :  { %v341_v51 = vadd.f32 %v340_v50, %v339_v49 }
 0x1c6   :  { %3493 = vtanh.f32 %v341_v51 }
 0x1d0   :  { %v3494_v52 = vpop.eup %3493 }
 0x1d1   :  { %v3993_v54 = vmul.f32 %v3494_v52, %v337_v53 }
 0x1d3   :  { %2506 = vmatmul.mubr.f32.vlgmr.msra.gmra.mrb[8].mxu0 %v3993_v54 }
 0x1d4   :  { %3127 = vmatpush3.bf16.msra.mxu0 %v3838_v5  ;;  %2575 = vmatprep.mubr.msk.f32.mxu0 %vm3717_vm0, %v3718_v1 }
 0x1d5   :  { %3128 = vmatprep.subr.bf16.mxu0 %v3716_v0 }
 0x1d8   :  { %3130 = vmatpush3.bf16.msra.mxu0 %v3844_v7 }
 0x1d9   :  { %3131 = vmatprep.subr.bf16.mxu0 %v3716_v0 }
 0x1dc   :  { %3133 = vmatpush3.bf16.msra.mxu0 %v3864_v13 }
 0x1dd   :  { %3134 = vmatprep.subr.bf16.mxu0 %v3716_v0 }
 0x1e0   :  { %3136 = vmatpush3.bf16.msra.mxu0 %v3878_v16 }
 0x1e1   :  { %3137 = vmatprep.subr.bf16.mxu0 %v3716_v0 }
 0x1e4   :  { %3139 = vmatpush3.bf16.msra.mxu0 %v3890_v19 }
 0x1e5   :  { %3140 = vmatprep.subr.bf16.mxu0 %v3716_v0 }
 0x1e8   :  { %3142 = vmatpush3.bf16.msra.mxu0 %v3902_v22 }
 0x1e9   :  { %3143 = vmatprep.subr.bf16.mxu0 %v3716_v0 }
 0x1ec   :  { %3145 = vmatpush3.bf16.msra.mxu0 %v3914_v25 }
 0x1ed   :  { %3146 = vmatprep.subr.bf16.mxu0 %v3716_v0 }
 0x1f0   :  { %3148 = vmatpush3.bf16.msra.mxu0 %v3926_v28 }
 0x1f1   :  { %3173 = vmatprep.subr.bf16.mxu0 %v3716_v0 }
 0x2a6   :  { %v416_v62 = vpop.f32.mrb[8].mxu0 }
 0x2a7   :  { %v420_v63 = vadd.f32 %v416_v62, %v193_v61  ;;  %v2507_v2 = vpop.f32.mrb[9].mxu0 }
 0x2a8   :  { %v208_v2 = vadd.f32 %v3961_v31, %v4018_v58 }
 0x2a9   :  { %v2094_v3 = vmul.f32 -1.442695, %v420_v63  ;;  %3495 = vtanh.f32 %v420_v63 }
 0x2ab   :  { %3497 = vpow2.f32 %v2094_v3 }
 0x2b3   :  { %v3496_v4 = vpop.eup %3495 }
 0x2b4   :  { %430 = vrot.lane.b32.xlu0 %v3496_v4, %s3721_s18 }
 0x2b5   :  { %v3498_v6 = vpop.eup %3497 }
 0x2b6   :  { %v424_v8 = vadd.f32 1.0, %v3498_v6 }
 0x2b8   :  { %3499 = vrcp.f32 %v424_v8 }
 0x2c2   :  { %v3500_v9 = vpop.eup %3499 }
 0x2c3   :  { %428 = vrot.lane.b32.xlu1 %v3500_v9, %s3720_s22 }
 0x2c7   :  { %432 = vrot.lane.b32.xlu1 %v3500_v9, %s3719_s21 }
 0x326   :  { %v431_v10 = vpop.permute.xlu0 %430 }
 0x327   :  { %v436_v12 = vmul.f32 %v3500_v9, %v431_v10 }
 0x335   :  { %v429_v11 = vpop.permute.xlu1 %428 }
 0x336   :  { %v435_v14 = vmul.f32 %v429_v11, %v341_v51 }
 0x338   :  { %v437_v15 = vadd.f32 %v436_v12, %v435_v14 }
 0x339   :  { %v433_v18 = vpop.permute.xlu1 %432 }
 0x33a   :  { %3501 = vtanh.f32 %v437_v15 }
 0x344   :  { %v3502_v17 = vpop.eup %3501 }
 0x345   :  { %v4029_v20 = vmul.f32 %v3502_v17, %v433_v18 }
 0x347   :  { %2541 = vmatmul.mubr.f32.vlgmr.msra.gmra.mrb[2].mxu1 %v4029_v20 }
 0x348   :  { %3151 = vmatpush3.bf16.msra.mxu1 %v3838_v5  ;;  %2610 = vmatprep.mubr.msk.f32.mxu1 %vm3717_vm0, %v3718_v1 }
 0x349   :  { %3152 = vmatprep.subr.bf16.mxu1 %v3716_v0 }
 0x34c   :  { %3154 = vmatpush3.bf16.msra.mxu1 %v3844_v7 }
 0x34d   :  { %3155 = vmatprep.subr.bf16.mxu1 %v3716_v0 }
 0x350   :  { %3157 = vmatpush3.bf16.msra.mxu1 %v3864_v13 }
 0x351   :  { %3158 = vmatprep.subr.bf16.mxu1 %v3716_v0 }
 0x354   :  { %3160 = vmatpush3.bf16.msra.mxu1 %v3878_v16 }
 0x355   :  { %3161 = vmatprep.subr.bf16.mxu1 %v3716_v0 }
 0x358   :  { %3163 = vmatpush3.bf16.msra.mxu1 %v3890_v19 }
 0x359   :  { %3164 = vmatprep.subr.bf16.mxu1 %v3716_v0 }
 0x35c   :  { %3166 = vmatpush3.bf16.msra.mxu1 %v3902_v22 }
 0x35d   :  { %3167 = vmatprep.subr.bf16.mxu1 %v3716_v0 }
 0x360   :  { %3169 = vmatpush3.bf16.msra.mxu1 %v3914_v25 }
 0x361   :  { %3170 = vmatprep.subr.bf16.mxu1 %v3716_v0 }
 0x364   :  { %3172 = vmatpush3.bf16.msra.mxu1 %v3926_v28 }
 0x365   :  { %3197 = vmatprep.subr.bf16.mxu1 %v3716_v0 }
 0x41a   :  { %v513_v23 = vpop.f32.mrb[2].mxu1 }
 0x41b   :  { %v517_v24 = vadd.f32 %v513_v23, %v198_v21  ;;  %v2542_v26 = vpop.f32.mrb[3].mxu1 }
 0x41d   :  { %v2095_v27 = vmul.f32 -1.442695, %v517_v24  ;;  %3503 = vtanh.f32 %v517_v24 }
 0x41f   :  { %3505 = vpow2.f32 %v2095_v27 }
 0x427   :  { %v3504_v29 = vpop.eup %3503 }
 0x428   :  { %527 = vrot.lane.b32.xlu1 %v3504_v29, %s3721_s18 }
 0x429   :  { %v3506_v30 = vpop.eup %3505 }
 0x42a   :  { %v521_v32 = vadd.f32 1.0, %v3506_v30 }
 0x42c   :  { %3507 = vrcp.f32 %v521_v32 }
 0x436   :  { %v3508_v33 = vpop.eup %3507 }
 0x437   :  { %525 = vrot.lane.b32.xlu0 %v3508_v33, %s3720_s22 }
 0x43b   :  { %529 = vrot.lane.b32.xlu0 %v3508_v33, %s3719_s21 }
 0x49a   :  { %v528_v34 = vpop.permute.xlu1 %527 }
 0x49b   :  { %v533_v36 = vmul.f32 %v3508_v33, %v528_v34 }
 0x4a9   :  { %v526_v35 = vpop.permute.xlu0 %525 }
 0x4aa   :  { %v532_v37 = vmul.f32 %v526_v35, %v437_v15 }
 0x4ac   :  { %v534_v38 = vadd.f32 %v533_v36, %v532_v37  ;;  %v1036_v36 = vld [vmem:[%s4458_s4 + $0x10] sm:$0xff]  ;;  %v1037_v37 = vld [vmem:[%s4458_s4 + $0x18] sm:$0xff] }
 0x4ad   :  { %v530_v40 = vpop.permute.xlu0 %529 }
 0x4ae   :  { %3509 = vtanh.f32 %v534_v38 }
 0x4b8   :  { %v3510_v39 = vpop.eup %3509 }
 0x4b9   :  { %v4054_v41 = vmul.f32 %v3510_v39, %v530_v40 }
 0x4bb   :  { %2576 = vmatmul.mubr.f32.vlgmr.msra.gmra.mrb[10].mxu0 %v4054_v41 }
 0x4bc   :  { %3175 = vmatpush3.bf16.msra.mxu0 %v3838_v5  ;;  %2645 = vmatprep.mubr.msk.f32.mxu0 %vm3717_vm0, %v3718_v1 }
 0x4bd   :  { %3176 = vmatprep.subr.bf16.mxu0 %v3716_v0 }
 0x4c0   :  { %3178 = vmatpush3.bf16.msra.mxu0 %v3844_v7 }
 0x4c1   :  { %3179 = vmatprep.subr.bf16.mxu0 %v3716_v0 }
 0x4c4   :  { %3181 = vmatpush3.bf16.msra.mxu0 %v3864_v13 }
 0x4c5   :  { %3182 = vmatprep.subr.bf16.mxu0 %v3716_v0 }
 0x4c8   :  { %3184 = vmatpush3.bf16.msra.mxu0 %v3878_v16 }
 0x4c9   :  { %3185 = vmatprep.subr.bf16.mxu0 %v3716_v0 }
 0x4cc   :  { %3187 = vmatpush3.bf16.msra.mxu0 %v3890_v19 }
 0x4cd   :  { %3188 = vmatprep.subr.bf16.mxu0 %v3716_v0 }
 0x4d0   :  { %3190 = vmatpush3.bf16.msra.mxu0 %v3902_v22 }
 0x4d1   :  { %3191 = vmatprep.subr.bf16.mxu0 %v3716_v0 }
 0x4d4   :  { %3193 = vmatpush3.bf16.msra.mxu0 %v3914_v25 }
 0x4d5   :  { %3194 = vmatprep.subr.bf16.mxu0 %v3716_v0 }
 0x4d8   :  { %3196 = vmatpush3.bf16.msra.mxu0 %v3926_v28 }
 0x4d9   :  { %3221 = vmatprep.subr.bf16.mxu0 %v3716_v0 }
 0x58e   :  { %v610_v43 = vpop.f32.mrb[10].mxu0 }
 0x58f   :  { %v614_v44 = vadd.f32 %v610_v43, %v203_v42  ;;  %v2577_v45 = vpop.f32.mrb[11].mxu0  ;;  %v3249_v42 = vpack.c.bf16 %v1037_v37, %v1036_v36  ;;  %v1038_v43 = vld [vmem:[%s4458_s4 + $0x20] sm:$0xff]  ;;  %v1184_v37 = vld [vmem:[#allocation6 + $0x70] sm:$0xff] }
 0x591   :  { %v2096_v46 = vmul.f32 -1.442695, %v614_v44  ;;  %3511 = vtanh.f32 %v614_v44  ;;  %v1039_v44 = vld [vmem:[%s4458_s4 + $0x28] sm:$0xff] }
 0x592   :  { %v3253_v45 = vpack.c.bf16 %v1039_v44, %v1038_v43 }
 0x593   :  { %3513 = vpow2.f32 %v2096_v46  ;;  %v1040_v46 = vld [vmem:[%s4458_s4 + $0x30] sm:$0xff] }
 0x59b   :  { %v3512_v47 = vpop.eup %3511 }
 0x59c   :  { %624 = vrot.lane.b32.xlu0 %v3512_v47, %s3721_s18  ;;  %v1041_v47 = vld [vmem:[%s4458_s4 + $0x38] sm:$0xff] }
 0x59d   :  { %v3514_v48 = vpop.eup %3513 }
 0x59e   :  { %v618_v49 = vadd.f32 1.0, %v3514_v48  ;;  %v3257_v48 = vpack.c.bf16 %v1041_v47, %v1040_v46 }
 0x5a0   :  { %3515 = vrcp.f32 %v618_v49  ;;  %v1042_v49 = vld [vmem:[%s4458_s4 + $0x40] sm:$0xff] }
 0x5aa   :  { %v3516_v50 = vpop.eup %3515 }
 0x5ab   :  { %622 = vrot.lane.b32.xlu1 %v3516_v50, %s3720_s22 }
 0x5af   :  { %626 = vrot.lane.b32.xlu1 %v3516_v50, %s3719_s21 }
 0x60e   :  { %v625_v51 = vpop.permute.xlu0 %624 }
 0x60f   :  { %v630_v53 = vmul.f32 %v3516_v50, %v625_v51  ;;  %v1044_v51 = vld [vmem:[%s4458_s4 + $0x50] sm:$0xff] }
 0x61d   :  { %v623_v52 = vpop.permute.xlu1 %622 }
 0x61e   :  { %v629_v55 = vmul.f32 %v623_v52, %v534_v38  ;;  %v1045_v52 = vld [vmem:[%s4458_s4 + $0x58] sm:$0xff] }
 0x620   :  { %v631_v56 = vadd.f32 %v630_v53, %v629_v55  ;;  %v3265_v53 = vpack.c.bf16 %v1045_v52, %v1044_v51  ;;  %v1046_v55 = vld [vmem:[%s4458_s4 + $0x60] sm:$0xff] }
 0x621   :  { %v627_v62 = vpop.permute.xlu1 %626 }
 0x622   :  { %3517 = vtanh.f32 %v631_v56 }
 0x62c   :  { %v3518_v61 = vpop.eup %3517 }
 0x62d   :  { %v4080_v63 = vmul.f32 %v3518_v61, %v627_v62  ;;  %v1048_v62 = vld [vmem:[%s4458_s4 + $0x70] sm:$0xff] }
 0x62f   :  { %2611 = vmatmul.mubr.f32.vlgmr.msra.gmra.mrb[4].mxu1 %v4080_v63 }
 0x630   :  { %3199 = vmatpush3.bf16.msra.mxu1 %v3838_v5  ;;  %2680 = vmatprep.mubr.msk.f32.mxu1 %vm3717_vm0, %v3718_v1 }
 0x631   :  { %3200 = vmatprep.subr.bf16.mxu1 %v3716_v0 }
 0x634   :  { %3202 = vmatpush3.bf16.msra.mxu1 %v3844_v7 }
 0x635   :  { %3203 = vmatprep.subr.bf16.mxu1 %v3716_v0 }
 0x638   :  { %3205 = vmatpush3.bf16.msra.mxu1 %v3864_v13 }
 0x639   :  { %3206 = vmatprep.subr.bf16.mxu1 %v3716_v0 }
 0x63c   :  { %3208 = vmatpush3.bf16.msra.mxu1 %v3878_v16 }
 0x63d   :  { %3209 = vmatprep.subr.bf16.mxu1 %v3716_v0 }
 0x640   :  { %3211 = vmatpush3.bf16.msra.mxu1 %v3890_v19 }
 0x641   :  { %3212 = vmatprep.subr.bf16.mxu1 %v3716_v0 }
 0x644   :  { %3214 = vmatpush3.bf16.msra.mxu1 %v3902_v22 }
 0x645   :  { %3215 = vmatprep.subr.bf16.mxu1 %v3716_v0 }
 0x648   :  { %3217 = vmatpush3.bf16.msra.mxu1 %v3914_v25 }
 0x649   :  { %3218 = vmatprep.subr.bf16.mxu1 %v3716_v0 }
 0x64c   :  { %3220 = vmatpush3.bf16.msra.mxu1 %v3926_v28 }
 0x702   :  { %v707_v3 = vpop.f32.mrb[4].mxu1 }
 0x703   :  { %v711_v4 = vadd.f32 %v707_v3, %v208_v2  ;;  %v2612_v6 = vpop.f32.mrb[5].mxu1  ;;  %v1049_v2 = vld [vmem:[%s4458_s4 + $0x78] sm:$0xff] }
 0x704   :  { %v3273_v3 = vpack.c.bf16 %v1049_v2, %v1048_v62 }
 0x705   :  { %v2097_v8 = vmul.f32 -1.442695, %v711_v4  ;;  %3519 = vtanh.f32 %v711_v4  ;;  %v218_v4 = vadd.f32 %v3961_v31, %v4022_v60 }
 0x707   :  { %3521 = vpow2.f32 %v2097_v8 }
 0x70f   :  { %v3520_v9 = vpop.eup %3519 }
 0x710   :  { %721 = vrot.lane.b32.xlu1 %v3520_v9, %s3721_s18 }
 0x711   :  { %v3522_v10 = vpop.eup %3521 }
 0x712   :  { %v715_v11 = vadd.f32 1.0, %v3522_v10 }
 0x714   :  { %3523 = vrcp.f32 %v715_v11 }
 0x71e   :  { %v3524_v12 = vpop.eup %3523 }
 0x71f   :  { %719 = vrot.lane.b32.xlu0 %v3524_v12, %s3720_s22 }
 0x723   :  { %723 = vrot.lane.b32.xlu0 %v3524_v12, %s3719_s21 }
 0x782   :  { %v722_v14 = vpop.permute.xlu1 %721 }
 0x783   :  { %v727_v58 = vmul.f32 %v3524_v12, %v722_v14  ;;  %v1171_v14 = vld [vmem:[#allocation6 + $0x8] sm:$0xff] }
 0x791   :  { %v720_v15 = vpop.permute.xlu0 %719 }
 0x792   :  { %v726_v17 = vmul.f32 %v720_v15, %v631_v56  ;;  %v1047_v56 = vld [vmem:[%s4458_s4 + $0x68] sm:$0xff] }
 0x793   :  { %v3269_v61 = vpack.c.bf16 %v1047_v56, %v1046_v55 }
 0x794   :  { %v728_v18 = vadd.f32 %v727_v58, %v726_v17  ;;  %v1172_v17 = vld [vmem:[#allocation6 + $0x10] sm:$0xff] }
 0x795   :  { %v724_v23 = vpop.permute.xlu0 %723 }
 0x796   :  { %3525 = vtanh.f32 %v728_v18 }
 0x7a0   :  { %v3526_v21 = vpop.eup %3525 }
 0x7a1   :  { %v4105_v24 = vmul.f32 %v3526_v21, %v724_v23 }
 0x7a3   :  { %2646 = vmatmul.mubr.f32.vlgmr.msra.gmra.mrb[12].mxu0 %v4105_v24 }
 0x7a4   :  { %3223 = vmatpush3.bf16.msra.mxu0 %v3838_v5  ;;  %2715 = vmatprep.mubr.msk.f32.mxu0 %vm3717_vm0, %v3718_v1  ;;  %v213_v5 = vadd.f32 %v4016_v57, %v3961_v31  ;;  %v1035_v57 = vld [vmem:[%s4458_s4 + $0x8] sm:$0xff] }
 0x7a5   :  { %3224 = vmatprep.subr.bf16.mxu0 %v3716_v0 }
 0x7a8   :  { %3226 = vmatpush3.bf16.msra.mxu0 %v3844_v7 }
 0x7a9   :  { %3227 = vmatprep.subr.bf16.mxu0 %v3716_v0 }
 0x7ac   :  { %3229 = vmatpush3.bf16.msra.mxu0 %v3864_v13 }
 0x7ad   :  { %3230 = vmatprep.subr.bf16.mxu0 %v3716_v0 }
 0x7b0   :  { %3232 = vmatpush3.bf16.msra.mxu0 %v3878_v16 }
 0x7b1   :  { %3233 = vmatprep.subr.bf16.mxu0 %v3716_v0 }
 0x7b4   :  { %3235 = vmatpush3.bf16.msra.mxu0 %v3890_v19 }
 0x7b5   :  { %3236 = vmatprep.subr.bf16.mxu0 %v3716_v0 }
 0x7b8   :  { %3238 = vmatpush3.bf16.msra.mxu0 %v3902_v22 }
 0x7b9   :  { %3239 = vmatprep.subr.bf16.mxu0 %v3716_v0 }
 0x7bc   :  { %3241 = vmatpush3.bf16.msra.mxu0 %v3914_v25 }
 0x7bd   :  { %3242 = vmatprep.subr.bf16.mxu0 %v3716_v0 }
 0x7c0   :  { %3244 = vmatpush3.bf16.msra.mxu0 %v3926_v28  ;;  %v1034_v28 = vld [vmem:[%s4458_s4] sm:$0xff] }
 0x7c1   :  { %3277 = vmatprep.subr.bf16.mxu0 %v3716_v0  ;;  %v3245_v29 = vpack.c.bf16 %v1035_v57, %v1034_v28  ;;  %v1179_v28 = vld [vmem:[#allocation6 + $0x48] sm:$0xff] }
 0x7c3   :  { %3246 = vmatprep.subr.bf16.mxu1 %v3245_v29 }
 0x876   :  { %v804_v7 = vpop.f32.mrb[12].mxu0 }
 0x877   :  { %v808_v13 = vadd.f32 %v804_v7, %v213_v5  ;;  %v2647_v16 = vpop.f32.mrb[13].mxu0  ;;  %v1174_v5 = vld [vmem:[#allocation6 + $0x20] sm:$0xff]  ;;  %v1175_v7 = vld [vmem:[#allocation6 + $0x28] sm:$0xff] }
 0x878   :  { %v4211_v16 = vpack.c.bf16 %v1175_v7, %v1174_v5 }
 0x879   :  { %v2098_v19 = vmul.f32 -1.442695, %v808_v13  ;;  %3527 = vtanh.f32 %v808_v13 }
 0x87b   :  { %3529 = vpow2.f32 %v2098_v19 }
 0x883   :  { %v3528_v22 = vpop.eup %3527 }
 0x884   :  { %818 = vrot.lane.b32.xlu0 %v3528_v22, %s3721_s18  ;;  %v1176_v22 = vld [vmem:[#allocation6 + $0x30] sm:$0xff] }
 0x885   :  { %v3530_v26 = vpop.eup %3529 }
 0x886   :  { %v812_v25 = vadd.f32 1.0, %v3530_v26  ;;  %v1177_v26 = vld [vmem:[#allocation6 + $0x38] sm:$0xff] }
 0x888   :  { %3531 = vrcp.f32 %v812_v25  ;;  %v4217_v25 = vpack.c.bf16 %v1177_v26, %v1176_v22 }
 0x892   :  { %v3532_v27 = vpop.eup %3531 }
 0x893   :  { %816 = vrot.lane.b32.xlu1 %v3532_v27, %s3720_s22 }
 0x897   :  { %820 = vrot.lane.b32.xlu1 %v3532_v27, %s3719_s21 }
 0x8f6   :  { %v819_v30 = vpop.permute.xlu0 %818 }
 0x8f7   :  { %v824_v33 = vmul.f32 %v3532_v27, %v819_v30  ;;  %v1178_v27 = vld [vmem:[#allocation6 + $0x40] sm:$0xff]  ;;  %v1181_v30 = vld [vmem:[#allocation6 + $0x58] sm:$0xff] }
 0x8f8   :  { %v4221_v57 = vpack.c.bf16 %v1179_v28, %v1178_v27 }
 0x905   :  { %v817_v32 = vpop.permute.xlu1 %816 }
 0x906   :  { %v823_v34 = vmul.f32 %v817_v32, %v728_v18  ;;  %v1173_v18 = vld [vmem:[#allocation6 + $0x18] sm:$0xff] }
 0x907   :  { %v4203_v23 = vpack.c.bf16 %v1173_v18, %v1172_v17 }
 0x908   :  { %v4137_v35 = vadd.f32 %v824_v33, %v823_v34  ;;  %v1182_v33 = vld [vmem:[#allocation6 + $0x60] sm:$0xff]  ;;  %v1183_v34 = vld [vmem:[#allocation6 + $0x68] sm:$0xff] }
 0x909   :  { %v821_v39 = vpop.permute.xlu1 %820  ;;  %v4229_v36 = vpack.c.bf16 %v1183_v34, %v1182_v33 }
 0x90a   :  { %3533 = vtanh.f32 %v4137_v35 }
 0x914   :  { %v3534_v38 = vpop.eup %3533 }
 0x915   :  { %v827_v40 = vmul.f32 %v3534_v38, %v821_v39  ;;  %v1185_v38 = vld [vmem:[#allocation6 + $0x78] sm:$0xff] }
 0x916   :  { %v4233_v39 = vpack.c.bf16 %v1185_v38, %v1184_v37 }
 0x917   :  { %2681 = vmatmul.mubr.f32.vlgmr.msra.gmra.mrb[6].mxu1 %v827_v40 }
 0x918   :  { %3248 = vmatpush3.bf16.msra.mxu1 %v3245_v29  ;;  %2750 = vmatprep.mubr.f32.mxu1 %v3993_v54  ;;  %v1043_v54 = vld [vmem:[%s4458_s4 + $0x48] sm:$0xff]  ;;  %v1180_v29 = vld [vmem:[#allocation6 + $0x50] sm:$0xff] }
 0x919   :  { %3250 = vmatprep.subr.bf16.mxu1 %v3249_v42  ;;  %v3261_v50 = vpack.c.bf16 %v1043_v54, %v1042_v49  ;;  %v4225_v32 = vpack.c.bf16 %v1181_v30, %v1180_v29 }
 0x91c   :  { %3252 = vmatpush3.bf16.msra.mxu1 %v3249_v42 }
 0x91d   :  { %3254 = vmatprep.subr.bf16.mxu1 %v3253_v45 }
 0x920   :  { %3256 = vmatpush3.bf16.msra.mxu1 %v3253_v45 }
 0x921   :  { %3258 = vmatprep.subr.bf16.mxu1 %v3257_v48 }
 0x924   :  { %3260 = vmatpush3.bf16.msra.mxu1 %v3257_v48 }
 0x925   :  { %3262 = vmatprep.subr.bf16.mxu1 %v3261_v50 }
 0x928   :  { %3264 = vmatpush3.bf16.msra.mxu1 %v3261_v50 }
 0x929   :  { %3266 = vmatprep.subr.bf16.mxu1 %v3265_v53 }
 0x92c   :  { %3268 = vmatpush3.bf16.msra.mxu1 %v3265_v53 }
 0x92d   :  { %3270 = vmatprep.subr.bf16.mxu1 %v3269_v61 }
 0x930   :  { %3272 = vmatpush3.bf16.msra.mxu1 %v3269_v61  ;;  %v4284_v61 = vld [vmem:[%s4460_s6] ss:$0 sm:$0xff] }
 0x931   :  { %3274 = vmatprep.subr.bf16.mxu1 %v3273_v3 }
 0x934   :  { %3276 = vmatpush3.bf16.msra.mxu1 %v3273_v3 }
 0x935   :  { %3301 = vmatprep.subr.bf16.mxu1 %v3716_v0 }
 0x937   :  { %2751 = vmatmul.mubr.f32.vlgmr.msra.gmra.mrb[8].mxu1 %v4029_v20 }
 0x938   :  { %2753 = vmatprep.mubr.f32.mxu1 %v4054_v41 }
 0x93b   :  { %2754 = vmatmul.mubr.f32.gmra.mrb[10].mxu1 %v4080_v63  ;;  %v1170_v63 = vld [vmem:[#allocation6] sm:$0xff] }
 0x93c   :  { %2756 = vmatprep.mubr.f32.mxu1 %v4105_v24  ;;  %v4194_v60 = vpack.c.bf16 %v1171_v14, %v1170_v63 }
 0x93e   :  { %3303 = vmatpush3.bf16.msra.mxu1 %v4194_v60 }
 0x93f   :  { %2757 = vmatmul.mubr.f32.gmra.mrb[12].mxu1 %v827_v40  ;;  %3304 = vmatprep.subr.bf16.mxu1 %v3716_v0 }
 0x942   :  { %3306 = vmatpush3.bf16.msra.mxu1 %v4203_v23 }
 0x943   :  { %3307 = vmatprep.subr.bf16.mxu1 %v3716_v0 }
 0x946   :  { %3309 = vmatpush3.bf16.msra.mxu1 %v4211_v16 }
 0x947   :  { %3310 = vmatprep.subr.bf16.mxu1 %v3716_v0 }
 0x94a   :  { %3312 = vmatpush3.bf16.msra.mxu1 %v4217_v25 }
 0x94b   :  { %3313 = vmatprep.subr.bf16.mxu1 %v3716_v0 }
 0x94e   :  { %3315 = vmatpush3.bf16.msra.mxu1 %v4221_v57 }
 0x94f   :  { %3316 = vmatprep.subr.bf16.mxu1 %v3716_v0 }
 0x952   :  { %3318 = vmatpush3.bf16.msra.mxu1 %v4225_v32 }
 0x953   :  { %3319 = vmatprep.subr.bf16.mxu1 %v3716_v0 }
 0x956   :  { %3321 = vmatpush3.bf16.msra.mxu1 %v4229_v36 }
 0x957   :  { %3322 = vmatprep.subr.bf16.mxu1 %v3716_v0 }
 0x95a   :  { %3324 = vmatpush3.bf16.msra.mxu1 %v4233_v39 }
 0x95b   :  { %3349 = vmatprep.subr.bf16.mxu1 %v3716_v0 }
 0x9ea   :  { %v901_v6 = vpop.f32.mrb[6].mxu1 }
 0x9eb   :  { %v905_v8 = vadd.f32 %v901_v6, %v218_v4  ;;  %v2682_v9 = vpop.f32.mrb[7].mxu1 }
 0x9ed   :  { %v2099_v10 = vmul.f32 -1.442695, %v905_v8  ;;  %3535 = vtanh.f32 %v905_v8 }
 0x9ef   :  { %3537 = vpow2.f32 %v2099_v10 }
 0x9f7   :  { %v3536_v11 = vpop.eup %3535 }
 0x9f8   :  { %915 = vrot.lane.b32.xlu1 %v3536_v11, %s3721_s18 }
 0x9f9   :  { %v3538_v20 = vpop.eup %3537 }
 0x9fa   :  { %v909_v12 = vadd.f32 1.0, %v3538_v20 }
 0x9fc   :  { %3539 = vrcp.f32 %v909_v12 }
 0xa06   :  { %v3540_v41 = vpop.eup %3539 }
 0xa07   :  { %913 = vrot.lane.b32.xlu0 %v3540_v41, %s3720_s22 }
 0xa0a   :  { %v4192_v15 = vpop.f32.mrb[8].mxu1 }
 0xa0b   :  { %v4196_v58 = vpop.f32.mrb[9].mxu1  ;;  %917 = vrot.lane.b32.xlu0 %v3540_v41, %s3719_s21  ;;  %v1129_v33 = vadd.f32 %v4192_v15, %v4284_v61 }
 0xa0e   :  { %v4201_v21 = vpop.f32.mrb[10].mxu1 }
 0xa0f   :  { %v4205_v24 = vpop.f32.mrb[11].mxu1 }
 0xa12   :  { %v4209_v13 = vpop.f32.mrb[12].mxu1 }
 0xa13   :  { %v4213_v19 = vpop.f32.mrb[13].mxu1 }
 0xa6a   :  { %v916_v40 = vpop.permute.xlu1 %915 }
 0xa6b   :  { %v921_v43 = vmul.f32 %v3540_v41, %v916_v40 }
 0xa79   :  { %v914_v42 = vpop.permute.xlu0 %913 }
 0xa7a   :  { %v920_v44 = vmul.f32 %v914_v42, %v4137_v35  ;;  %v223_v35 = vadd.f32 %v4020_v59, %v3961_v31  ;;  %v1124_v31 = vadd.f32 %v4284_v61, %v4196_v58 }
 0xa7c   :  { %v4238_v45 = vadd.f32 %v921_v43, %v920_v44 }
 0xa7d   :  { %v918_v47 = vpop.permute.xlu0 %917 }
 0xa7e   :  { %3541 = vtanh.f32 %v4238_v45 }
 0xa88   :  { %v3542_v46 = vpop.eup %3541 }
 0xa89   :  { %v924_v48 = vmul.f32 %v3542_v46, %v918_v47 }
 0xa8b   :  { %2716 = vmatmul.mubr.f32.vlgmr.msra.gmra.mrb[14].mxu0 %v924_v48  ;;  %2759 = vmatprep.mubr.f32.mxu1 %v924_v48 }
 0xa8c   :  { %3279 = vmatpush3.bf16.msra.mxu0 %v4194_v60  ;;  %2794 = vmatprep.mubr.msk.f32.mxu0 %vm3717_vm0, %v3718_v1 }
 0xa8d   :  { %3280 = vmatprep.subr.bf16.mxu0 %v3716_v0 }
 0xa90   :  { %3282 = vmatpush3.bf16.msra.mxu0 %v4203_v23 }
 0xa91   :  { %3283 = vmatprep.subr.bf16.mxu0 %v3716_v0 }
 0xa94   :  { %3285 = vmatpush3.bf16.msra.mxu0 %v4211_v16 }
 0xa95   :  { %3286 = vmatprep.subr.bf16.mxu0 %v3716_v0 }
 0xa98   :  { %3288 = vmatpush3.bf16.msra.mxu0 %v4217_v25 }
 0xa99   :  { %3289 = vmatprep.subr.bf16.mxu0 %v3716_v0 }
 0xa9c   :  { %3291 = vmatpush3.bf16.msra.mxu0 %v4221_v57 }
 0xa9d   :  { %3292 = vmatprep.subr.bf16.mxu0 %v3716_v0 }
 0xaa0   :  { %3294 = vmatpush3.bf16.msra.mxu0 %v4225_v32 }
 0xaa1   :  { %3295 = vmatprep.subr.bf16.mxu0 %v3716_v0 }
 0xaa4   :  { %3297 = vmatpush3.bf16.msra.mxu0 %v4229_v36 }
 0xaa5   :  { %3298 = vmatprep.subr.bf16.mxu0 %v3716_v0 }
 0xaa8   :  { %3300 = vmatpush3.bf16.msra.mxu0 %v4233_v39 }
 0xaa9   :  { %3325 = vmatprep.subr.bf16.mxu0 %v3716_v0 }
 0xaab   :  { %2795 = vmatmul.mubr.f32.vlgmr.msra.gmra.mrb[16].mxu0 %v3718_v1 }
 0xaac   :  { %3327 = vmatpush3.bf16.msra.mxu0 %v4194_v60  ;;  %2864 = vmatprep.mubr.msk.f32.mxu0 %vm3717_vm0, %v3718_v1 }
 0xaad   :  { %3328 = vmatprep.subr.bf16.mxu0 %v3716_v0 }
 0xab0   :  { %3330 = vmatpush3.bf16.msra.mxu0 %v4203_v23 }
 0xab1   :  { %3331 = vmatprep.subr.bf16.mxu0 %v3716_v0 }
 0xab4   :  { %3333 = vmatpush3.bf16.msra.mxu0 %v4211_v16 }
 0xab5   :  { %3334 = vmatprep.subr.bf16.mxu0 %v3716_v0 }
 0xab8   :  { %3336 = vmatpush3.bf16.msra.mxu0 %v4217_v25 }
 0xab9   :  { %3337 = vmatprep.subr.bf16.mxu0 %v3716_v0 }
 0xabc   :  { %3339 = vmatpush3.bf16.msra.mxu0 %v4221_v57 }
 0xabd   :  { %3340 = vmatprep.subr.bf16.mxu0 %v3716_v0 }
 0xac0   :  { %3342 = vmatpush3.bf16.msra.mxu0 %v4225_v32 }
 0xac1   :  { %3343 = vmatprep.subr.bf16.mxu0 %v3716_v0 }
 0xac4   :  { %3345 = vmatpush3.bf16.msra.mxu0 %v4229_v36 }
 0xac5   :  { %3346 = vmatprep.subr.bf16.mxu0 %v3716_v0 }
 0xac8   :  { %3348 = vmatpush3.bf16.msra.mxu0 %v4233_v39 }
 0xac9   :  { %3373 = vmatprep.subr.bf16.mxu0 %v3716_v0 }
 0xb5e   :  { %v998_v49 = vpop.f32.mrb[14].mxu0 }
 0xb5f   :  { %v1002_v54 = vadd.f32 %v998_v49, %v223_v35  ;;  %v2717_v50 = vpop.f32.mrb[15].mxu0 }
 0xb61   :  { %v2100_v51 = vmul.f32 -1.442695, %v1002_v54  ;;  %3543 = vtanh.f32 %v1002_v54 }
 0xb63   :  { %3545 = vpow2.f32 %v2100_v51  ;;  %v1134_v51 = vadd.f32 %v4284_v61, %v4205_v24 }
 0xb6b   :  { %v3544_v52 = vpop.eup %3543 }
 0xb6c   :  { %1012 = vrot.lane.b32.xlu0 %v3544_v52, %s3721_s18 }
 0xb6d   :  { %v3546_v53 = vpop.eup %3545 }
 0xb6e   :  { %v1006_v55 = vadd.f32 1.0, %v3546_v53 }
 0xb70   :  { %3547 = vrcp.f32 %v1006_v55 }
 0xb7a   :  { %v3548_v56 = vpop.eup %3547 }
 0xb7b   :  { %1010 = vrot.lane.b32.xlu1 %v3548_v56, %s3720_s22 }
 0xb7e   :  { %v1256_v59 = vpop.f32.mrb[16].mxu0 }
 0xb7f   :  { %v1260_v62 = vadd.f32 %v1256_v59, %v1124_v31  ;;  %v2796_v2 = vpop.f32.mrb[17].mxu0 }
 0xb81   :  { %v2102_v3 = vmul.f32 -1.442695, %v1260_v62  ;;  %3549 = vtanh.f32 %v1260_v62 }
 0xb83   :  { %3551 = vpow2.f32 %v2102_v3 }
 0xb8b   :  { %v3550_v4 = vpop.eup %3549 }
 0xb8c   :  { %1270 = vrot.lane.b32.xlu0 %v3550_v4, %s3721_s18 }
 0xb8d   :  { %v3552_v6 = vpop.eup %3551 }
 0xb8e   :  { %v1264_v8 = vadd.f32 1.0, %v3552_v6 }
 0xb90   :  { %3553 = vrcp.f32 %v1264_v8 }
 0xb9a   :  { %v3554_v9 = vpop.eup %3553 }
 0xb9b   :  { %1272 = vrot.lane.b32.xlu0 %v3554_v9, %s3719_s21  ;;  %1268 = vrot.lane.b32.xlu1 %v3554_v9, %s3720_s22 }
 0xb9f   :  { %1014 = vrot.lane.b32.xlu1 %v3548_v56, %s3719_s21 }
 0xbde   :  { %v1013_v11 = vpop.permute.xlu0 %1012 }
 0xbdf   :  { %v1018_v12 = vmul.f32 %v3548_v56, %v1013_v11 }
 0xbed   :  { %v1011_v10 = vpop.permute.xlu1 %1010 }
 0xbee   :  { %v1017_v20 = vmul.f32 %v1011_v10, %v4238_v45 }
 0xbf0   :  { %v1019_v41 = vadd.f32 %v1018_v12, %v1017_v20  ;;  %v1139_v20 = vadd.f32 %v4201_v21, %v4284_v61 }
 0xbf2   :  { %3555 = vtanh.f32 %v1019_v41 }
 0xbfc   :  { %v3556_v5 = vpop.eup %3555 }
 0xbfe   :  { %v1271_v63 = vpop.permute.xlu0 %1270 }
 0xbff   :  { %v1276_v58 = vmul.f32 %v3554_v9, %v1271_v63 }
 0xc0d   :  { %v1269_v14 = vpop.permute.xlu1 %1268  ;;  %v1273_v27 = vpop.permute.xlu0 %1272 }
 0xc0e   :  { %v1275_v17 = vmul.f32 0.0, %v1269_v14 }
 0xc10   :  { %v1277_v18 = vadd.f32 %v1276_v58, %v1275_v17 }
 0xc11   :  { %v1015_v7 = vpop.permute.xlu1 %1014 }
 0xc12   :  { %3557 = vtanh.f32 %v1277_v18  ;;  %v1021_v22 = vmul.f32 %v3556_v5, %v1015_v7 }
 0xc14   :  { %2760 = vmatmul.mubr.f32.gmra.mrb[14].mxu1 %v1021_v22 }
 0xc15   :  { %2829 = vmatprep.mubr.msk.f32.mxu1 %vm3717_vm0, %v3718_v1 }
 0xc1c   :  { %v3558_v26 = vpop.eup %3557 }
 0xc1d   :  { %v1279_v28 = vmul.f32 %v3558_v26, %v1273_v27 }
 0xc1f   :  { %2830 = vmatmul.mubr.f32.vlgmr.msra.gmra.mrb[16].mxu1 %v1279_v28 }
 0xc20   :  { %3351 = vmatpush3.bf16.msra.mxu1 %v4194_v60  ;;  %2899 = vmatprep.mubr.msk.f32.mxu1 %vm3717_vm0, %v3718_v1 }
 0xc21   :  { %3352 = vmatprep.subr.bf16.mxu1 %v3716_v0 }
 0xc24   :  { %3354 = vmatpush3.bf16.msra.mxu1 %v4203_v23 }
 0xc25   :  { %3355 = vmatprep.subr.bf16.mxu1 %v3716_v0 }
 0xc28   :  { %3357 = vmatpush3.bf16.msra.mxu1 %v4211_v16 }
 0xc29   :  { %3358 = vmatprep.subr.bf16.mxu1 %v3716_v0 }
 0xc2c   :  { %3360 = vmatpush3.bf16.msra.mxu1 %v4217_v25 }
 0xc2d   :  { %3361 = vmatprep.subr.bf16.mxu1 %v3716_v0 }
 0xc30   :  { %3363 = vmatpush3.bf16.msra.mxu1 %v4221_v57 }
 0xc31   :  { %3364 = vmatprep.subr.bf16.mxu1 %v3716_v0 }
 0xc34   :  { %3366 = vmatpush3.bf16.msra.mxu1 %v4225_v32 }
 0xc35   :  { %3367 = vmatprep.subr.bf16.mxu1 %v3716_v0 }
 0xc38   :  { %3369 = vmatpush3.bf16.msra.mxu1 %v4229_v36 }
 0xc39   :  { %3370 = vmatprep.subr.bf16.mxu1 %v3716_v0 }
 0xc3c   :  { %3372 = vmatpush3.bf16.msra.mxu1 %v4233_v39 }
 0xc3d   :  { %3397 = vmatprep.subr.bf16.mxu1 %v3716_v0 }
 0xce7   :  { %v4314_v29 = vpop.f32.mrb[14].mxu1 }
 0xce8   :  { %v4316_v30 = vpop.f32.mrb[15].mxu1 }
 0xcf2   :  { %v1350_v34 = vpop.f32.mrb[16].mxu1 }
 0xcf3   :  { %v1354_v37 = vadd.f32 %v1350_v34, %v1129_v33  ;;  %v2831_v38 = vpop.f32.mrb[17].mxu1 }
 0xcf5   :  { %v2103_v40 = vmul.f32 -1.442695, %v1354_v37  ;;  %3559 = vtanh.f32 %v1354_v37  ;;  %v1144_v37 = vadd.f32 %v4284_v61, %v4213_v19 }
 0xcf7   :  { %3561 = vpow2.f32 %v2103_v40 }
 0xcff   :  { %v3560_v42 = vpop.eup %3559 }
 0xd00   :  { %1364 = vrot.lane.b32.xlu0 %v3560_v42, %s3721_s18 }
 0xd01   :  { %v3562_v43 = vpop.eup %3561 }
 0xd02   :  { %v1358_v44 = vadd.f32 1.0, %v3562_v43 }
 0xd04   :  { %3563 = vrcp.f32 %v1358_v44 }
 0xd0e   :  { %v3564_v45 = vpop.eup %3563 }
 0xd0f   :  { %1362 = vrot.lane.b32.xlu1 %v3564_v45, %s3720_s22 }
 0xd13   :  { %1366 = vrot.lane.b32.xlu1 %v3564_v45, %s3719_s21 }
 0xd72   :  { %v1365_v46 = vpop.permute.xlu0 %1364 }
 0xd73   :  { %v1370_v15 = vmul.f32 %v3564_v45, %v1365_v46 }
 0xd81   :  { %v1363_v47 = vpop.permute.xlu1 %1362 }
 0xd82   :  { %v1369_v48 = vmul.f32 %v1363_v47, %v1277_v18 }
 0xd84   :  { %v1371_v35 = vadd.f32 %v1370_v15, %v1369_v48 }
 0xd85   :  { %v1367_v54 = vpop.permute.xlu1 %1366 }
 0xd86   :  { %3565 = vtanh.f32 %v1371_v35 }
 0xd90   :  { %v3566_v49 = vpop.eup %3565 }
 0xd91   :  { %v1373_v50 = vmul.f32 %v3566_v49, %v1367_v54 }
 0xd93   :  { %2865 = vmatmul.mubr.f32.vlgmr.msra.gmra.mrb[18].mxu0 %v1373_v50 }
 0xd94   :  { %3375 = vmatpush3.bf16.msra.mxu0 %v4194_v60  ;;  %2934 = vmatprep.mubr.msk.f32.mxu0 %vm3717_vm0, %v3718_v1 }
 0xd95   :  { %3376 = vmatprep.subr.bf16.mxu0 %v3716_v0 }
 0xd98   :  { %3378 = vmatpush3.bf16.msra.mxu0 %v4203_v23 }
 0xd99   :  { %3379 = vmatprep.subr.bf16.mxu0 %v3716_v0 }
 0xd9c   :  { %3381 = vmatpush3.bf16.msra.mxu0 %v4211_v16 }
 0xd9d   :  { %3382 = vmatprep.subr.bf16.mxu0 %v3716_v0 }
 0xda0   :  { %3384 = vmatpush3.bf16.msra.mxu0 %v4217_v25 }
 0xda1   :  { %3385 = vmatprep.subr.bf16.mxu0 %v3716_v0 }
 0xda4   :  { %3387 = vmatpush3.bf16.msra.mxu0 %v4221_v57 }
 0xda5   :  { %3388 = vmatprep.subr.bf16.mxu0 %v3716_v0 }
 0xda8   :  { %3390 = vmatpush3.bf16.msra.mxu0 %v4225_v32 }
 0xda9   :  { %3391 = vmatprep.subr.bf16.mxu0 %v3716_v0 }
 0xdac   :  { %3393 = vmatpush3.bf16.msra.mxu0 %v4229_v36 }
 0xdad   :  { %3394 = vmatprep.subr.bf16.mxu0 %v3716_v0 }
 0xdb0   :  { %3396 = vmatpush3.bf16.msra.mxu0 %v4233_v39 }
 0xdb1   :  { %3421 = vmatprep.subr.bf16.mxu0 %v3716_v0 }
 0xe66   :  { %v1444_v52 = vpop.f32.mrb[18].mxu0 }
 0xe67   :  { %v1448_v53 = vadd.f32 %v1444_v52, %v1134_v51  ;;  %v2866_v55 = vpop.f32.mrb[19].mxu0 }
 0xe69   :  { %v2104_v56 = vmul.f32 -1.442695, %v1448_v53  ;;  %3567 = vtanh.f32 %v1448_v53 }
 0xe6b   :  { %3569 = vpow2.f32 %v2104_v56 }
 0xe73   :  { %v3568_v31 = vpop.eup %3567 }
 0xe74   :  { %1458 = vrot.lane.b32.xlu1 %v3568_v31, %s3721_s18 }
 0xe75   :  { %v3570_v59 = vpop.eup %3569 }
 0xe76   :  { %v1452_v62 = vadd.f32 1.0, %v3570_v59 }
 0xe78   :  { %3571 = vrcp.f32 %v1452_v62 }
 0xe82   :  { %v3572_v2 = vpop.eup %3571 }
 0xe83   :  { %1456 = vrot.lane.b32.xlu0 %v3572_v2, %s3720_s22 }
 0xe87   :  { %1460 = vrot.lane.b32.xlu0 %v3572_v2, %s3719_s21 }
 0xee6   :  { %v1459_v3 = vpop.permute.xlu1 %1458 }
 0xee7   :  { %v1464_v24 = vmul.f32 %v3572_v2, %v1459_v3  ;;  %v1154_v3 = vadd.f32 %v4284_v61, %v4316_v30 }
 0xef5   :  { %v1457_v4 = vpop.permute.xlu0 %1456 }
 0xef6   :  { %v1463_v6 = vmul.f32 %v1457_v4, %v1371_v35 }
 0xef8   :  { %v1465_v8 = vadd.f32 %v1464_v24, %v1463_v6 }
 0xef9   :  { %v1461_v10 = vpop.permute.xlu0 %1460 }
 0xefa   :  { %3573 = vtanh.f32 %v1465_v8 }
 0xf04   :  { %v3574_v9 = vpop.eup %3573 }
 0xf05   :  { %v1467_v11 = vmul.f32 %v3574_v9, %v1461_v10 }
 0xf07   :  { %2900 = vmatmul.mubr.f32.vlgmr.msra.gmra.mrb[18].mxu1 %v1467_v11 }
 0xf08   :  { %3399 = vmatpush3.bf16.msra.mxu1 %v4194_v60  ;;  %2969 = vmatprep.mubr.msk.f32.mxu1 %vm3717_vm0, %v3718_v1 }
 0xf09   :  { %3400 = vmatprep.subr.bf16.mxu1 %v3716_v0 }
 0xf0c   :  { %3402 = vmatpush3.bf16.msra.mxu1 %v4203_v23 }
 0xf0d   :  { %3403 = vmatprep.subr.bf16.mxu1 %v3716_v0 }
 0xf10   :  { %3405 = vmatpush3.bf16.msra.mxu1 %v4211_v16 }
 0xf11   :  { %3406 = vmatprep.subr.bf16.mxu1 %v3716_v0 }
 0xf14   :  { %3408 = vmatpush3.bf16.msra.mxu1 %v4217_v25 }
 0xf15   :  { %3409 = vmatprep.subr.bf16.mxu1 %v3716_v0 }
 0xf18   :  { %3411 = vmatpush3.bf16.msra.mxu1 %v4221_v57 }
 0xf19   :  { %3412 = vmatprep.subr.bf16.mxu1 %v3716_v0 }
 0xf1c   :  { %3414 = vmatpush3.bf16.msra.mxu1 %v4225_v32 }
 0xf1d   :  { %3415 = vmatprep.subr.bf16.mxu1 %v3716_v0 }
 0xf20   :  { %3417 = vmatpush3.bf16.msra.mxu1 %v4229_v36 }
 0xf21   :  { %3418 = vmatprep.subr.bf16.mxu1 %v3716_v0 }
 0xf24   :  { %3420 = vmatpush3.bf16.msra.mxu1 %v4233_v39 }
 0xf25   :  { %3445 = vmatprep.subr.bf16.mxu1 %v3716_v0 }
 0xfda   :  { %v1538_v12 = vpop.f32.mrb[18].mxu1 }
 0xfdb   :  { %v1542_v41 = vadd.f32 %v1538_v12, %v1139_v20  ;;  %v2901_v63 = vpop.f32.mrb[19].mxu1 }
 0xfdd   :  { %v2105_v14 = vmul.f32 -1.442695, %v1542_v41  ;;  %3575 = vtanh.f32 %v1542_v41 }
 0xfdf   :  { %3577 = vpow2.f32 %v2105_v14 }
 0xfe7   :  { %v3576_v58 = vpop.eup %3575 }
 0xfe8   :  { %1552 = vrot.lane.b32.xlu0 %v3576_v58, %s3721_s18 }
 0xfe9   :  { %v3578_v17 = vpop.eup %3577 }
 0xfea   :  { %v1546_v18 = vadd.f32 1.0, %v3578_v17 }
 0xfec   :  { %3579 = vrcp.f32 %v1546_v18  ;;  %v1159_v18 = vadd.f32 %v4314_v29, %v4284_v61  ;;  %v1981_v29 = vld [vmem:[%s4463_s9 + $0x8] sm:$0xff] }
 0xff6   :  { %v3580_v5 = vpop.eup %3579 }
 0xff7   :  { %1550 = vrot.lane.b32.xlu1 %v3580_v5, %s3720_s22 }
 0xffb   :  { %1554 = vrot.lane.b32.xlu1 %v3580_v5, %s3719_s21 }
0x105a   :  { %v1553_v7 = vpop.permute.xlu0 %1552 }
0x105b   :  { %v1558_v21 = vmul.f32 %v3580_v5, %v1553_v7 }
0x1069   :  { %v1551_v22 = vpop.permute.xlu1 %1550 }
0x106a   :  { %v1557_v26 = vmul.f32 %v1551_v22, %v1465_v8 }
0x106c   :  { %v1559_v27 = vadd.f32 %v1558_v21, %v1557_v26 }
0x106d   :  { %v1555_v33 = vpop.permute.xlu1 %1554 }
0x106e   :  { %3581 = vtanh.f32 %v1559_v27 }
0x1078   :  { %v3582_v28 = vpop.eup %3581 }
0x1079   :  { %v1561_v34 = vmul.f32 %v3582_v28, %v1555_v33 }
0x107b   :  { %2935 = vmatmul.mubr.f32.vlgmr.msra.gmra.mrb[20].mxu0 %v1561_v34 }
0x107c   :  { %3423 = vmatpush3.bf16.msra.mxu0 %v4194_v60  ;;  %3004 = vmatprep.mubr.msk.f32.mxu0 %vm3717_vm0, %v3718_v1 }
0x107d   :  { %3424 = vmatprep.subr.bf16.mxu0 %v3716_v0 }
0x1080   :  { %3426 = vmatpush3.bf16.msra.mxu0 %v4203_v23 }
0x1081   :  { %3427 = vmatprep.subr.bf16.mxu0 %v3716_v0 }
0x1084   :  { %3429 = vmatpush3.bf16.msra.mxu0 %v4211_v16 }
0x1085   :  { %3430 = vmatprep.subr.bf16.mxu0 %v3716_v0 }
0x1088   :  { %3432 = vmatpush3.bf16.msra.mxu0 %v4217_v25 }
0x1089   :  { %3433 = vmatprep.subr.bf16.mxu0 %v3716_v0 }
0x108c   :  { %3435 = vmatpush3.bf16.msra.mxu0 %v4221_v57 }
0x108d   :  { %3436 = vmatprep.subr.bf16.mxu0 %v3716_v0 }
0x1090   :  { %3438 = vmatpush3.bf16.msra.mxu0 %v4225_v32 }
0x1091   :  { %3439 = vmatprep.subr.bf16.mxu0 %v3716_v0 }
0x1094   :  { %3441 = vmatpush3.bf16.msra.mxu0 %v4229_v36 }
0x1095   :  { %3442 = vmatprep.subr.bf16.mxu0 %v3716_v0 }
0x1098   :  { %3444 = vmatpush3.bf16.msra.mxu0 %v4233_v39 }
0x1099   :  { %3469 = vmatprep.subr.bf16.mxu0 %v3716_v0 }
0x114e   :  { %v1632_v38 = vpop.f32.mrb[20].mxu0 }
0x114f   :  { %v1636_v40 = vadd.f32 %v1632_v38, %v1144_v37  ;;  %v2936_v42 = vpop.f32.mrb[21].mxu0  ;;  %v1982_v37 = vld [vmem:[%s4463_s9 + $0x10] sm:$0xff]  ;;  %v1983_v38 = vld [vmem:[%s4463_s9 + $0x18] sm:$0xff] }
0x1151   :  { %v2106_v43 = vmul.f32 -1.442695, %v1636_v40  ;;  %3583 = vtanh.f32 %v1636_v40  ;;  %v3473_v40 = vpack.c.bf16 %v1983_v38, %v1982_v37 }
0x1153   :  { %3585 = vpow2.f32 %v2106_v43 }
0x115b   :  { %v3584_v44 = vpop.eup %3583 }
0x115c   :  { %1646 = vrot.lane.b32.xlu1 %v3584_v44, %s3721_s18 }
0x115d   :  { %v3586_v45 = vpop.eup %3585 }
0x115e   :  { %v1640_v46 = vadd.f32 1.0, %v3586_v45 }
0x1160   :  { %3587 = vrcp.f32 %v1640_v46 }
0x116a   :  { %v3588_v47 = vpop.eup %3587 }
0x116b   :  { %1644 = vrot.lane.b32.xlu0 %v3588_v47, %s3720_s22 }
0x116f   :  { %1648 = vrot.lane.b32.xlu0 %v3588_v47, %s3719_s21 }
0x11ce   :  { %v1647_v15 = vpop.permute.xlu1 %1646 }
0x11cf   :  { %v1652_v19 = vmul.f32 %v3588_v47, %v1647_v15 }
0x11dd   :  { %v1645_v48 = vpop.permute.xlu0 %1644 }
0x11de   :  { %v1651_v35 = vmul.f32 %v1645_v48, %v1559_v27 }
0x11e0   :  { %v1653_v49 = vadd.f32 %v1652_v19, %v1651_v35 }
0x11e1   :  { %v1649_v50 = vpop.permute.xlu0 %1648 }
0x11e2   :  { %3589 = vtanh.f32 %v1653_v49 }
0x11ec   :  { %v3590_v54 = vpop.eup %3589 }
0x11ed   :  { %v1655_v51 = vmul.f32 %v3590_v54, %v1649_v50 }
0x11ef   :  { %2970 = vmatmul.mubr.f32.vlgmr.msra.gmra.mrb[20].mxu1 %v1655_v51 }
0x11f0   :  { %3447 = vmatpush3.bf16.msra.mxu1 %v4194_v60  ;;  %3039 = vmatprep.mubr.msk.f32.mxu1 %vm3717_vm0, %v3718_v1  ;;  %v1149_v60 = vadd.f32 %v4209_v13, %v4284_v61  ;;  %v1980_v61 = vld [vmem:[%s4463_s9] sm:$0xff] }
0x11f1   :  { %3448 = vmatprep.subr.bf16.mxu1 %v3716_v0  ;;  %v3470_v34 = vpack.c.bf16 %v1981_v29, %v1980_v61 }
0x11f4   :  { %3450 = vmatpush3.bf16.msra.mxu1 %v4203_v23 }
0x11f5   :  { %3451 = vmatprep.subr.bf16.mxu1 %v3716_v0 }
0x11f8   :  { %3453 = vmatpush3.bf16.msra.mxu1 %v4211_v16 }
0x11f9   :  { %3454 = vmatprep.subr.bf16.mxu1 %v3716_v0 }
0x11fc   :  { %3456 = vmatpush3.bf16.msra.mxu1 %v4217_v25 }
0x11fd   :  { %3457 = vmatprep.subr.bf16.mxu1 %v3716_v0 }
0x1200   :  { %3459 = vmatpush3.bf16.msra.mxu1 %v4221_v57 }
0x1201   :  { %3460 = vmatprep.subr.bf16.mxu1 %v3716_v0 }
0x1204   :  { %3462 = vmatpush3.bf16.msra.mxu1 %v4225_v32 }
0x1205   :  { %3463 = vmatprep.subr.bf16.mxu1 %v3716_v0 }
0x1208   :  { %3465 = vmatpush3.bf16.msra.mxu1 %v4229_v36 }
0x1209   :  { %3466 = vmatprep.subr.bf16.mxu1 %v3716_v0 }
0x120c   :  { %3468 = vmatpush3.bf16.msra.mxu1 %v4233_v39 }
0x12c2   :  { %v1726_v23 = vpop.f32.mrb[20].mxu1 }
0x12c3   :  { %v1730_v16 = vadd.f32 %v1726_v23, %v1149_v60  ;;  %v2971_v25 = vpop.f32.mrb[21].mxu1 }
0x12c5   :  { %v2107_v52 = vmul.f32 -1.442695, %v1730_v16  ;;  %3591 = vtanh.f32 %v1730_v16 }
0x12c7   :  { %3593 = vpow2.f32 %v2107_v52 }
0x12cf   :  { %v3592_v57 = vpop.eup %3591 }
0x12d0   :  { %1740 = vrot.lane.b32.xlu0 %v3592_v57, %s3721_s18 }
0x12d1   :  { %v3594_v32 = vpop.eup %3593 }
0x12d2   :  { %v1734_v53 = vadd.f32 1.0, %v3594_v32 }
0x12d4   :  { %3595 = vrcp.f32 %v1734_v53 }
0x12de   :  { %v3596_v36 = vpop.eup %3595 }
0x12df   :  { %1738 = vrot.lane.b32.xlu1 %v3596_v36, %s3720_s22 }
0x12e3   :  { %1742 = vrot.lane.b32.xlu1 %v3596_v36, %s3719_s21 }
0x1342   :  { %v1741_v39 = vpop.permute.xlu0 %1740 }
0x1343   :  { %v1746_v13 = vmul.f32 %v3596_v36, %v1741_v39 }
0x1351   :  { %v1739_v55 = vpop.permute.xlu1 %1738 }
0x1352   :  { %v1745_v56 = vmul.f32 %v1739_v55, %v1653_v49 }
0x1354   :  { %v1747_v31 = vadd.f32 %v1746_v13, %v1745_v56 }
0x1355   :  { %v1743_v62 = vpop.permute.xlu1 %1742 }
0x1356   :  { %3597 = vtanh.f32 %v1747_v31 }
0x1360   :  { %v3598_v59 = vpop.eup %3597 }
0x1361   :  { %v1749_v2 = vmul.f32 %v3598_v59, %v1743_v62  ;;  %v2111_v62 = vld [vmem:[#allocation11] ss:$0 sm:$0xff] }
0x1363   :  { %3005 = vmatmul.mubr.f32.vlgmr.msra.gmra.mrb[22].mxu0 %v1749_v2 }
0x1364   :  { %3050 = vmatprep.mubr.msk.f32.mxu0 %vm3717_vm0, %v3718_v1  ;;  %3471 = vmatpush3.bf16.msra.mxu0 %v3470_v34 }
0x1365   :  { %3472 = vmatprep.subr.bf16.mxu0 %v3716_v0 }
0x1368   :  { %3474 = vmatpush3.bf16.msra.mxu0 %v3473_v40 }
0x1436   :  { %v1820_v4 = vpop.f32.mrb[22].mxu0 }
0x1437   :  { %v1824_v24 = vadd.f32 %v1820_v4, %v1154_v3  ;;  %v3006_v6 = vpop.f32.mrb[23].mxu0  ;;  %v2112_v4 = vld [vmem:[%s4464_s10] ss:$0 sm:$0xff] }
0x1439   :  { %v2108_v8 = vmul.f32 -1.442695, %v1824_v24  ;;  %3599 = vtanh.f32 %v1824_v24 }
0x143b   :  { %3601 = vpow2.f32 %v2108_v8 }
0x1443   :  { %v3600_v9 = vpop.eup %3599 }
0x1444   :  { %1834 = vrot.lane.b32.xlu1 %v3600_v9, %s3721_s18 }
0x1445   :  { %v3602_v10 = vpop.eup %3601 }
0x1446   :  { %v1828_v11 = vadd.f32 1.0, %v3602_v10 }
0x1448   :  { %3603 = vrcp.f32 %v1828_v11 }
0x1452   :  { %v3604_v20 = vpop.eup %3603 }
0x1453   :  { %1832 = vrot.lane.b32.xlu0 %v3604_v20, %s3720_s22 }
0x1457   :  { %1836 = vrot.lane.b32.xlu0 %v3604_v20, %s3719_s21 }
0x14b6   :  { %v1835_v1 = vpop.permute.xlu1 %1834 }
0x14b7   :  { %v1840_v30 = vmul.f32 %v3604_v20, %v1835_v1 }
0x14c5   :  { %v1833_v12 = vpop.permute.xlu0 %1832 }
0x14c6   :  { %v1839_v41 = vmul.f32 %v1833_v12, %v1747_v31  ;;  %v2110_v31 = vld [vmem:[#allocation9] ss:$0 sm:$0xff] }
0x14c8   :  { %v1841_v63 = vadd.f32 %v1840_v30, %v1839_v41 }
0x14c9   :  { %v1837_v58 = vpop.permute.xlu0 %1836 }
0x14ca   :  { %3605 = vtanh.f32 %v1841_v63 }
0x14d4   :  { %v3606_v14 = vpop.eup %3605 }
0x14d5   :  { %v1843_v17 = vmul.f32 %v3606_v14, %v1837_v58 }
0x14d7   :  { %3040 = vmatmul.mubr.f32.vlgmr.msra.gmra.mrb[22].mxu1 %v1843_v17 }
0x15aa   :  { %v1914_v5 = vpop.f32.mrb[22].mxu1 }
0x15ab   :  { %v1918_v7 = vadd.f32 %v1914_v5, %v1159_v18  ;;  %v3041_v22 = vpop.f32.mrb[23].mxu1 }
0x15ad   :  { %v2109_v21 = vmul.f32 -1.442695, %v1918_v7  ;;  %3607 = vtanh.f32 %v1918_v7 }
0x15af   :  { %3609 = vpow2.f32 %v2109_v21 }
0x15b7   :  { %v3608_v26 = vpop.eup %3607 }
0x15b8   :  { %1928 = vrot.lane.b32.xlu0 %v3608_v26, %s3721_s18 }
0x15b9   :  { %v3610_v27 = vpop.eup %3609 }
0x15ba   :  { %v1922_v28 = vadd.f32 1.0, %v3610_v27 }
0x15bc   :  { %3611 = vrcp.f32 %v1922_v28 }
0x15c6   :  { %v3612_v33 = vpop.eup %3611 }
0x15c7   :  { %1926 = vrot.lane.b32.xlu1 %v3612_v33, %s3720_s22 }
0x15cb   :  { %1930 = vrot.lane.b32.xlu1 %v3612_v33, %s3719_s21 }
0x162a   :  { %v1929_v42 = vpop.permute.xlu0 %1928 }
0x162b   :  { %v1934_v44 = vmul.f32 %v3612_v33, %v1929_v42 }
0x1639   :  { %v1927_v43 = vpop.permute.xlu1 %1926 }
0x163a   :  { %v1933_v45 = vmul.f32 %v1927_v43, %v1841_v63 }
0x163c   :  { %v1935_v46 = vadd.f32 %v1934_v44, %v1933_v45 }
0x163d   :  { %v1931_v15 = vpop.permute.xlu1 %1930 }
0x163e   :  { %3613 = vtanh.f32 %v1935_v46 }
0x1648   :  { %v3614_v47 = vpop.eup %3613 }
0x1649   :  { %v1937_v0 = vmul.f32 %v3614_v47, %v1931_v15 }
0x164b   :  { %v1942_v48 = vsel %vm1941_vm3, %v1937_v0, 0.0 }
0x164c   :  { %v1943_v19 = vrot.slane %v1942_v48, 4 }
0x164e   :  { %v1944_v35 = vadd.f32 %v1943_v19, %v1942_v48 }
0x1650   :  { %v1945_v49 = vrot.slane %v1944_v35, 2 }
0x1652   :  { %v1946_v54 = vadd.f32 %v1945_v49, %v1944_v35 }
0x1654   :  { %v1947_v50 = vrot.slane %v1946_v54, 1 }
0x1656   :  { %v1948_v51 = vadd.f32 %v1947_v50, %v1946_v54 }
0x1658   :  { %v1950_v60 = vmul.f32 0.25, %v1948_v51 }
0x165a   :  { %v1951_v23 = vsub.f32 %v1937_v0, %v1950_v60 }
0x165c   :  { %v1952_v16 = vmul.f32 %v1951_v23, %v1951_v23 }
0x165e   :  { %v1953_v25 = vsel %vm1941_vm3, %v1952_v16, 0.0 }
0x165f   :  { %v1954_v52 = vrot.slane %v1953_v25, 4 }
0x1661   :  { %v1955_v57 = vadd.f32 %v1954_v52, %v1953_v25 }
0x1663   :  { %v1956_v32 = vrot.slane %v1955_v57, 2 }
0x1665   :  { %v1957_v53 = vadd.f32 %v1956_v32, %v1955_v57 }
0x1667   :  { %v1958_v36 = vrot.slane %v1957_v53, 1 }
0x1669   :  { %v1959_v39 = vadd.f32 %v1958_v36, %v1957_v53 }
0x166b   :  { %v1960_v55 = vmul.f32 0.25, %v1959_v39 }
0x166d   :  { %v1961_v13 = vadd.f32 1e-05, %v1960_v55 }
0x166f   :  { %3615 = vrsqrt.f32 %v1961_v13 }
0x1679   :  { %v3616_v56 = vpop.eup %3615 }
0x167a   :  { %v1963_v59 = vmul.f32 %v3616_v56, %v1951_v23 }
0x167c   :  { %v1971_v2 = vmul.f32 %v2110_v31, %v1963_v59 }
0x167e   :  { %v1979_v3 = vadd.f32 %v2111_v62, %v1971_v2 }
0x1680   :  { %3051 = vmatmul.mubr.msk.f32.vlgmr.msra.gmra.mrb[24].mxu0 %vm1991_vm4, %v1979_v3 }
0x1753   :  { %v2061_v24 = vpop.f32.mrb[24].mxu0 }
0x1754   :  { %v2062_v6 = vadd.f32 %v2112_v4, %v2061_v24  ;;  %v3052_v8 = vpop.f32.mrb[25].mxu0 }
0x1756   :  { %2066 = vst.msk [vmem:[#allocation12] sm:$0xf] %vm2065_vm5, %v2062_v6 }
0x1757   :  { %3694 = shalt.err (!%p3691_p0)
}
0x1758   :  { %s3695_s19 = scalar_lea.hbm %s4465_s11, 64 }
0x1759   :  { %p3696_p1 = scmp.ne.s32.totalorder %s4465_s11, %s3695_s19  ;;  %p3699_p2 = scmp.lt.u32.totalorder %s3695_s19, %s4465_s11 }
0x175b   :  { %p3701_p3 = pnand %p3699_p2, %p3696_p1 }
0x175d   :  { %3704 = shalt.err (!%p3701_p3)
}
0x175e   :  { %2076 = dma.vmem_to_hbm [thread:$0]  %s2074_s5, 64, %s4465_s11, [#allocation8]  }
0x175f   :  { %3709 = dma.done.wait [#allocation8], 64  }
0x1760   :  { %3710 = vsyncadd [#allocation8], 4294967232 }
0x1761   :  { %2080 = vsyncpa [#allocation7], 1 }
0x1762   :  { %2081 = vsyncpa [#allocation10], 1 }
0x1763   :  { %2082 = vsyncpa [#allocation8], 1 }

</bundles_post_ra>
